<compile_context>
chip_gen: v6e
topology: v6e:2x2x1
jax: 0.10.0
libtpu: 0.0.40
codegen_flags: <defaults>
</compile_context>

<pallas_src>
import functools
import math

import jax
import jax.numpy as jnp
from jax.experimental import pallas as pl
from jax.experimental.pallas import tpu as pltpu


def _cross_attn_kernel(x_ref, y_ref, w_in_ref, b_in_ref, w_out_ref, b_out_ref,
                       gamma_ref, beta_ref, *out_refs,
                       d_model, num_heads, eps, lk_valid, need_weights):
    if need_weights:
        o_ref, attn_ref, k_sc, v_sc = out_refs
    else:
        o_ref, k_sc, v_sc = out_refs
        attn_ref = None

    head_dim = d_model // num_heads
    scale = 1.0 / math.sqrt(head_dim)
    inv_heads = 1.0 / num_heads
    cdt = x_ref.dtype          # compute dtype == input dtype (bf16 stays bf16 on the MXU)
    lk_pad = k_sc.shape[0]

    def mm_t(a, w):
        # a @ w.T (contract last dims of both): no XLU transpose, f32 accumulation on the MXU.
        return jax.lax.dot_general(
            a, w, dimension_numbers=(((1,), (1,)), ((), ())),
            preferred_element_type=jnp.float32)

    # ---- K/V projection: once per batch element, kept in VMEM scratch across q-tiles -------
    @pl.when(pl.program_id(1) == 0)
    def _project_kv():
        y_c = y_ref[...].astype(cdt)                                    # (Lk_pad, D)
        wk = w_in_ref[d_model:2 * d_model, :]
        wv = w_in_ref[2 * d_model:3 * d_model, :]
        k_sc[...] = (mm_t(y_c, wk) + b_in_ref[1:2, :].astype(jnp.float32)).astype(cdt)
        v_sc[...] = (mm_t(y_c, wv) + b_in_ref[2:3, :].astype(jnp.float32)).astype(cdt)

    # ---- Pre-LayerNorm on the query stream (stats in f32) -----------------------------------
    xf = x_ref[...].astype(jnp.float32)                                 # (TQ, D)
    mean = jnp.mean(xf, axis=-1, keepdims=True)
    var = jnp.mean(jnp.square(xf - mean), axis=-1, keepdims=True)
    xn = (xf - mean) * jax.lax.rsqrt(var + eps)
    xn = xn * gamma_ref[...].astype(jnp.float32) + beta_ref[...].astype(jnp.float32)

    # ---- Q projection: bias + 1/sqrt(Dh) fused with the single cast to compute dtype --------
    wq = w_in_ref[0:d_model, :]
    q_c = ((mm_t(xn.astype(cdt), wq) + b_in_ref[0:1, :].astype(jnp.float32))
           * scale).astype(cdt)                                         # (TQ, D)

    # Additive mask for padded key columns (hoisted out of the head loop; static no-op if
    # the encoder length already is a multiple of 128).
    if lk_valid != lk_pad:
        col = jax.lax.broadcasted_iota(jnp.int32, (1, lk_pad), 1)
        score_bias = jnp.where(col < lk_valid, 0.0, -1e30).astype(jnp.float32)
    else:
        score_bias = None

    k_c = k_sc[...]
    v_c = v_sc[...]

    # ---- Per-head attention (num_heads is small -> static unroll) ---------------------------
    # NOTE(v6e/v7x): the QK^T contraction is only head_dim wide; the in/out projections
    # (contraction = D) are the MXU-efficient matmuls this kernel is organized around.
    ctx_heads = []
    probs_sum = None
    for h in range(num_heads):
        lo, hi = h * head_dim, (h + 1) * head_dim
        s = mm_t(q_c[:, lo:hi], k_c[:, lo:hi])                          # (TQ, Lk_pad) f32
        if score_bias is not None:
            s = s + score_bias
        e = jnp.exp(s - jnp.max(s, axis=-1, keepdims=True))
        denom = jnp.sum(e, axis=-1, keepdims=True)                      # (TQ, 1) f32

        if need_weights:
            inv_denom = 1.0 / denom                                     # exact (shared below)
            p_w = e * (inv_denom * inv_heads)                           # 1/H folded into row scale
            probs_sum = p_w if probs_sum is None else probs_sum + p_w
        else:
            # Weights not exported: normalize AFTER the PV matmul with the (free) EUP recip.
            inv_denom = pl.reciprocal(denom, approx=True)

        ctx_h = jnp.dot(e.astype(cdt), v_c[:, lo:hi],
                        preferred_element_type=jnp.float32)             # (TQ, Dh) f32
        ctx_heads.append(ctx_h * inv_denom)

    if need_weights:
        attn_ref[...] = probs_sum.astype(attn_ref.dtype)

    # One wide concat + single cast feeds the output projection directly (no scratch round trip,
    # no per-head masked vst stores).
    ctx = jnp.concatenate(ctx_heads, axis=-1).astype(cdt)               # (TQ, D)

    # ---- Output projection + residual --------------------------------------------------------
    attn_out = mm_t(ctx, w_out_ref[...]) + b_out_ref[...].astype(jnp.float32)
    o_ref[...] = (xf + attn_out).astype(o_ref.dtype)


def _default_tiling():
    """Pick q-tile size and VMEM budget per TPU generation (v5e/v6e: 128 MiB, v7x: 64 MiB)."""
    try:
        vmem = pltpu.get_tpu_info().vmem_capacity_bytes
    except Exception:
        vmem = 64 * 1024 * 1024
    if vmem >= 100 * 1024 * 1024:
        return 512, 96 * 1024 * 1024     # v5e / v6e
    return 256, 48 * 1024 * 1024         # v7x


def cross_attention_layer(x, y, params, *, num_heads, eps=1e-5, need_weights=True,
                          q_block=None, attn_dtype=None, vmem_limit_bytes=None):
    """x: (B, Lq, D) decoder stream, y: (B, Lk, D) encoder stream.

    Returns (out, averaged_attn_weights) if need_weights else out.
    """
    B, Lq, D = x.shape
    _, Lk, _ = y.shape
    assert D % num_heads == 0
    cdt = x.dtype
    if attn_dtype is None:
        attn_dtype = x.dtype

    if q_block is None or vmem_limit_bytes is None:
        qb_def, vl_def = _default_tiling()
        q_block = qb_def if q_block is None else q_block
        vmem_limit_bytes = vl_def if vmem_limit_bytes is None else vmem_limit_bytes

    # Query-tile size: full Lq if small, otherwise a multiple of 8 (sublane tiling).
    tq = Lq if Lq <= q_block else max(8, (q_block // 8) * 8)
    nq = pl.cdiv(Lq, tq)

    # Pad encoder length to a multiple of 128: lane-dense attention-weight stores and
    # MXU-aligned N/K dims; padded columns are masked in-kernel and sliced off below.
    lk_pad = ((Lk + 127) // 128) * 128
    y_p = y if lk_pad == Lk else jnp.pad(y, ((0, 0), (0, lk_pad - Lk), (0, 0)))

    # One-off host-side casts/reshapes: projection weights live in the compute dtype,
    # small vectors stay f32 (they are consumed in f32 inside the kernel).
    w_in = params["w_in"].astype(cdt)                        # (3D, D)
    w_out = params["w_out"].astype(cdt)                      # (D, D)
    b_in = params["b_in"].reshape(3, D).astype(jnp.float32)
    b_out = params["b_out"].reshape(1, D).astype(jnp.float32)
    gamma = params["gamma"].reshape(1, D).astype(jnp.float32)
    beta = params["beta"].reshape(1, D).astype(jnp.float32)

    kernel = functools.partial(_cross_attn_kernel, d_model=D, num_heads=num_heads,
                               eps=eps, lk_valid=Lk, need_weights=need_weights)

    o_spec = pl.BlockSpec((None, tq, D), lambda b, qi: (b, qi, 0))
    if need_weights:
        out_shape = (jax.ShapeDtypeStruct((B, Lq, D), x.dtype),
                     jax.ShapeDtypeStruct((B, Lq, lk_pad), attn_dtype))
        out_specs = (o_spec, pl.BlockSpec((None, tq, lk_pad), lambda b, qi: (b, qi, 0)))
    else:
        out_shape = jax.ShapeDtypeStruct((B, Lq, D), x.dtype)
        out_specs = o_spec

    outs = pl.pallas_call(
        kernel,
        out_shape=out_shape,
        grid_spec=pltpu.PrefetchScalarGridSpec(
            num_scalar_prefetch=0,
            grid=(B, nq),
            in_specs=[
                pl.BlockSpec((None, tq, D), lambda b, qi: (b, qi, 0)),      # x tile
                pl.BlockSpec((None, lk_pad, D), lambda b, qi: (b, 0, 0)),   # y (full per batch)
                pl.BlockSpec((3 * D, D), lambda b, qi: (0, 0)),             # in_proj_weight (cdt)
                pl.BlockSpec((3, D), lambda b, qi: (0, 0)),                 # in_proj_bias   (f32)
                pl.BlockSpec((D, D), lambda b, qi: (0, 0)),                 # out_proj.weight(cdt)
                pl.BlockSpec((1, D), lambda b, qi: (0, 0)),                 # out_proj.bias
                pl.BlockSpec((1, D), lambda b, qi: (0, 0)),                 # norm.weight
                pl.BlockSpec((1, D), lambda b, qi: (0, 0)),                 # norm.bias
            ],
            out_specs=out_specs,
            scratch_shapes=[pltpu.VMEM((lk_pad, D), cdt),                   # K (per batch elem)
                            pltpu.VMEM((lk_pad, D), cdt)],                  # V (per batch elem)
        ),
        compiler_params=pltpu.CompilerParams(
            dimension_semantics=("parallel", "arbitrary"),
            vmem_limit_bytes=vmem_limit_bytes),
    )(x, y_p, w_in, b_in, w_out, b_out, gamma, beta)

    if need_weights:
        out, attn_w = outs
        if lk_pad != Lk:
            attn_w = attn_w[:, :, :Lk]
        return out, attn_w
    return outs


def _reference(x, y, params, *, num_heads, eps=1e-5):
    """Pure-JAX reference mirroring torch.nn.MultiheadAttention semantics."""
    B, Lq, D = x.shape
    Hd = D // num_heads
    mean = jnp.mean(x, axis=-1, keepdims=True)
    var = jnp.mean((x - mean) ** 2, axis=-1, keepdims=True)
    xn = (x - mean) / jnp.sqrt(var + eps) * params["gamma"] + params["beta"]

    wq, wk, wv = jnp.split(params["w_in"], 3, axis=0)
    bq, bk, bv = jnp.split(params["b_in"], 3, axis=0)
    q = xn @ wq.T + bq
    k = y @ wk.T + bk
    v = y @ wv.T + bv

    def heads(t):
        return t.reshape(B, -1, num_heads, Hd).transpose(0, 2, 1, 3)

    qh, kh, vh = heads(q), heads(k), heads(v)
    s = jnp.einsum("bhqd,bhkd->bhqk", qh, kh) / math.sqrt(Hd)
    p = jax.nn.softmax(s, axis=-1)
    ctx = jnp.einsum("bhqk,bhkd->bhqd", p, vh).transpose(0, 2, 1, 3).reshape(B, Lq, D)
    attn_out = ctx @ params["w_out"].T + params["b_out"]
    return x + attn_out, jnp.mean(p, axis=1)


def init_params(key, d_model):
    """Deterministic synthetic parameters (shapes match nn.MultiheadAttention/LayerNorm)."""
    k1, k2, k3, k4, k5, k6 = jax.random.split(key, 6)
    bound_in = math.sqrt(6.0 / (4 * d_model))          # xavier_uniform on (3D, D)
    bound_out = 1.0 / math.sqrt(d_model)
    return {
        "w_in": jax.random.uniform(k1, (3 * d_model, d_model), jnp.float32,
                                   -bound_in, bound_in),
        "b_in": 0.05 * jax.random.normal(k3, (3 * d_model,), jnp.float32),
        "w_out": jax.random.uniform(k2, (d_model, d_model), jnp.float32,
                                    -bound_out, bound_out),
        "b_out": 0.05 * jax.random.normal(k4, (d_model,), jnp.float32),
        "gamma": 1.0 + 0.1 * jax.random.normal(k5, (d_model,), jnp.float32),
        "beta": 0.05 * jax.random.normal(k6, (d_model,), jnp.float32),
    }


if __name__ == "__main__":
    B, Lq, Lk, D, H = 2, 8, 8, 32, 4
    key = jax.random.PRNGKey(0)
    kx, ky, kp = jax.random.split(key, 3)
    x = jax.random.normal(kx, (B, Lq, D), jnp.float32)
    y = jax.random.normal(ky, (B, Lk, D), jnp.float32)
    params = init_params(kp, D)

    out, attn_w = cross_attention_layer(x, y, params, num_heads=H)
    out = jax.block_until_ready(out)
    attn_w = jax.block_until_ready(attn_w)

    ref_out, ref_w = _reference(x, y, params, num_heads=H)
    assert out.shape == (B, Lq, D) and attn_w.shape == (B, Lq, Lk)
    assert jnp.allclose(out, ref_out, atol=5e-3, rtol=5e-3), \
        float(jnp.max(jnp.abs(out - ref_out)))
    # Exported attention weights use the exact reciprocal path -> tight tol.
    assert jnp.allclose(attn_w, ref_w, atol=1e-4, rtol=1e-4), \
        float(jnp.max(jnp.abs(attn_w - ref_w)))

    # Fast path without the quadratic weights output (approx EUP reciprocal on context).
    out_nw = cross_attention_layer(x, y, params, num_heads=H, need_weights=False)
    out_nw = jax.block_until_ready(out_nw)
    assert out_nw.shape == (B, Lq, D)
    assert jnp.allclose(out_nw, ref_out, atol=5e-3, rtol=5e-3), \
        float(jnp.max(jnp.abs(out_nw - ref_out)))

    print("KERNEL_OK")
</pallas_src>

<mosaic_0001>
module attributes {stable_mosaic.version = 11 : i64} {
  func.func @_cross_attn_kernel(%arg0: i32, %arg1: i32, %arg2: memref<1x8x32xf32, #tpu.memory_space<vmem>>, %arg3: memref<1x128x32xf32, #tpu.memory_space<vmem>>, %arg4: memref<96x32xf32, #tpu.memory_space<vmem>>, %arg5: memref<3x32xf32, #tpu.memory_space<vmem>>, %arg6: memref<32x32xf32, #tpu.memory_space<vmem>>, %arg7: memref<1x32xf32, #tpu.memory_space<vmem>>, %arg8: memref<1x32xf32, #tpu.memory_space<vmem>>, %arg9: memref<1x32xf32, #tpu.memory_space<vmem>>, %arg10: memref<1x8x32xf32, #tpu.memory_space<vmem>>, %arg11: memref<1x8x128xf32, #tpu.memory_space<vmem>>, %arg12: memref<128x32xf32, #tpu.memory_space<vmem>>, %arg13: memref<128x32xf32, #tpu.memory_space<vmem>>) attributes {dimension_semantics = [#tpu.dimension_semantics<parallel>, #tpu.dimension_semantics<arbitrary>], iteration_bounds = array<i64: 2, 1>, scalar_prefetch = 0 : i64, scratch_operands = 2 : i64, tpu.core_type = #tpu.core_type<tc>, window_params = [{transform_indices = @transform_0, window_bounds = array<i64: 1, 8, 32>}, {transform_indices = @transform_1, window_bounds = array<i64: 1, 128, 32>}, {pipeline_mode = #tpu.pipeline_mode<synchronous>, transform_indices = @transform_2, window_bounds = array<i64: 96, 32>}, {pipeline_mode = #tpu.pipeline_mode<synchronous>, transform_indices = @transform_3, window_bounds = array<i64: 3, 32>}, {pipeline_mode = #tpu.pipeline_mode<synchronous>, transform_indices = @transform_4, window_bounds = array<i64: 32, 32>}, {pipeline_mode = #tpu.pipeline_mode<synchronous>, transform_indices = @transform_5, window_bounds = array<i64: 1, 32>}, {pipeline_mode = #tpu.pipeline_mode<synchronous>, transform_indices = @transform_6, window_bounds = array<i64: 1, 32>}, {pipeline_mode = #tpu.pipeline_mode<synchronous>, transform_indices = @transform_7, window_bounds = array<i64: 1, 32>}, {transform_indices = @transform_8, window_bounds = array<i64: 1, 8, 32>}, {transform_indices = @transform_9, window_bounds = array<i64: 1, 8, 128>}]} {
    %c0_i32 = arith.constant 0 : i32
    %0 = arith.cmpi eq, %arg1, %c0_i32 : i32
    %1 = arith.extui %0 : i1 to i32
    %c0_i32_0 = arith.constant 0 : i32
    %2 = arith.cmpi ne, %1, %c0_i32_0 : i32
    scf.if %2 {
      %c0_58 = arith.constant 0 : index
      %c0_59 = arith.constant 0 : index
      %c0_60 = arith.constant 0 : index
      %148 = vector.load %arg3[%c0_58, %c0_59, %c0_60] : memref<1x128x32xf32, #tpu.memory_space<vmem>>, vector<1x128x32xf32>
      %149 = vector.shape_cast %148 : vector<1x128x32xf32> to vector<128x32xf32>
      %c32 = arith.constant 32 : index
      %c0_61 = arith.constant 0 : index
      %150 = vector.load %arg4[%c32, %c0_61] : memref<96x32xf32, #tpu.memory_space<vmem>>, vector<32x32xf32>
      %c64 = arith.constant 64 : index
      %c0_62 = arith.constant 0 : index
      %151 = vector.load %arg4[%c64, %c0_62] : memref<96x32xf32, #tpu.memory_space<vmem>>, vector<32x32xf32>
      %cst_63 = arith.constant dense<0.000000e+00> : vector<128x32xf32>
      %152 = tpu.matmul %149, %150, %cst_63 {dimension_numbers = #tpu.dot_dimension_numbers<[1], [1], [0], [0], [0, 0, 1, 0], [], []>} : vector<128x32xf32>, vector<32x32xf32>, vector<128x32xf32> -> vector<128x32xf32>
      %c1 = arith.constant 1 : index
      %c0_64 = arith.constant 0 : index
      %153 = vector.load %arg5[%c1, %c0_64] : memref<3x32xf32, #tpu.memory_space<vmem>>, vector<1x32xf32>
      %154 = vector.broadcast %153 : vector<1x32xf32> to vector<128x32xf32>
      %155 = arith.addf %152, %154 : vector<128x32xf32>
      %c0_65 = arith.constant 0 : index
      %c0_66 = arith.constant 0 : index
      %156 = vector.load %arg12[%c0_65, %c0_66] : memref<128x32xf32, #tpu.memory_space<vmem>>, vector<128x32xf32>
      tpu.vector_store %arg12[%c0_65, %c0_66], %155 {strides = array<i32>} : memref<128x32xf32, #tpu.memory_space<vmem>>, vector<128x32xf32>,
      %cst_67 = arith.constant dense<0.000000e+00> : vector<128x32xf32>
      %157 = tpu.matmul %149, %151, %cst_67 {dimension_numbers = #tpu.dot_dimension_numbers<[1], [1], [0], [0], [0, 0, 1, 0], [], []>} : vector<128x32xf32>, vector<32x32xf32>, vector<128x32xf32> -> vector<128x32xf32>
      %c2 = arith.constant 2 : index
      %c0_68 = arith.constant 0 : index
      %158 = vector.load %arg5[%c2, %c0_68] : memref<3x32xf32, #tpu.memory_space<vmem>>, vector<1x32xf32>
      %159 = vector.broadcast %158 : vector<1x32xf32> to vector<128x32xf32>
      %160 = arith.addf %157, %159 : vector<128x32xf32>
      %c0_69 = arith.constant 0 : index
      %c0_70 = arith.constant 0 : index
      %161 = vector.load %arg13[%c0_69, %c0_70] : memref<128x32xf32, #tpu.memory_space<vmem>>, vector<128x32xf32>
      tpu.vector_store %arg13[%c0_69, %c0_70], %160 {strides = array<i32>} : memref<128x32xf32, #tpu.memory_space<vmem>>, vector<128x32xf32>,
    } else {
    }
    %c0 = arith.constant 0 : index
    %c0_1 = arith.constant 0 : index
    %c0_2 = arith.constant 0 : index
    %3 = vector.load %arg2[%c0, %c0_1, %c0_2] : memref<1x8x32xf32, #tpu.memory_space<vmem>>, vector<1x8x32xf32>
    %4 = vector.shape_cast %3 : vector<1x8x32xf32> to vector<8x32xf32>
    %cst = arith.constant dense<0.000000e+00> : vector<8xf32>
    %5 = vector.multi_reduction <add>, %4, %cst [1] : vector<8x32xf32> to vector<8xf32>
    %6 = vector.shape_cast %5 : vector<8xf32> to vector<8x1xf32>
    %cst_3 = arith.constant 3.200000e+01 : f32
    %7 = vector.broadcast %cst_3 : f32 to vector<8x1xf32>
    %8 = arith.divf %6, %7 : vector<8x1xf32>
    %9 = vector.broadcast %8 : vector<8x1xf32> to vector<8x32xf32>
    %10 = arith.subf %4, %9 : vector<8x32xf32>
    %11 = arith.mulf %10, %10 : vector<8x32xf32>
    %cst_4 = arith.constant dense<0.000000e+00> : vector<8xf32>
    %12 = vector.multi_reduction <add>, %11, %cst_4 [1] : vector<8x32xf32> to vector<8xf32>
    %13 = vector.shape_cast %12 : vector<8xf32> to vector<8x1xf32>
    %cst_5 = arith.constant 3.200000e+01 : f32
    %14 = vector.broadcast %cst_5 : f32 to vector<8x1xf32>
    %15 = arith.divf %13, %14 : vector<8x1xf32>
    %16 = vector.broadcast %8 : vector<8x1xf32> to vector<8x32xf32>
    %17 = arith.subf %4, %16 : vector<8x32xf32>
    %cst_6 = arith.constant 9.99999974E-6 : f32
    %18 = vector.broadcast %cst_6 : f32 to vector<8x1xf32>
    %19 = arith.addf %15, %18 : vector<8x1xf32>
    %20 = math.rsqrt %19 : vector<8x1xf32>
    %21 = vector.broadcast %20 : vector<8x1xf32> to vector<8x32xf32>
    %22 = arith.mulf %17, %21 : vector<8x32xf32>
    %c0_7 = arith.constant 0 : index
    %c0_8 = arith.constant 0 : index
    %23 = vector.load %arg8[%c0_7, %c0_8] : memref<1x32xf32, #tpu.memory_space<vmem>>, vector<1x32xf32>
    %24 = vector.broadcast %23 : vector<1x32xf32> to vector<8x32xf32>
    %25 = arith.mulf %22, %24 : vector<8x32xf32>
    %c0_9 = arith.constant 0 : index
    %c0_10 = arith.constant 0 : index
    %26 = vector.load %arg9[%c0_9, %c0_10] : memref<1x32xf32, #tpu.memory_space<vmem>>, vector<1x32xf32>
    %27 = vector.broadcast %26 : vector<1x32xf32> to vector<8x32xf32>
    %28 = arith.addf %25, %27 : vector<8x32xf32>
    %c0_11 = arith.constant 0 : index
    %c0_12 = arith.constant 0 : index
    %29 = vector.load %arg4[%c0_11, %c0_12] : memref<96x32xf32, #tpu.memory_space<vmem>>, vector<32x32xf32>
    %cst_13 = arith.constant dense<0.000000e+00> : vector<8x32xf32>
    %30 = tpu.matmul %28, %29, %cst_13 {dimension_numbers = #tpu.dot_dimension_numbers<[1], [1], [0], [0], [0, 0, 1, 0], [], []>} : vector<8x32xf32>, vector<32x32xf32>, vector<8x32xf32> -> vector<8x32xf32>
    %c0_14 = arith.constant 0 : index
    %c0_15 = arith.constant 0 : index
    %31 = vector.load %arg5[%c0_14, %c0_15] : memref<3x32xf32, #tpu.memory_space<vmem>>, vector<1x32xf32>
    %32 = vector.broadcast %31 : vector<1x32xf32> to vector<8x32xf32>
    %33 = arith.addf %30, %32 : vector<8x32xf32>
    %cst_16 = arith.constant 0.353553385 : f32
    %34 = vector.broadcast %cst_16 : f32 to vector<8x32xf32>
    %35 = arith.mulf %33, %34 : vector<8x32xf32>
    %36 = tpu.iota {dimensions = array<i32: 1>} : vector<1x128xi32>
    %c8_i32 = arith.constant 8 : i32
    %37 = vector.broadcast %c8_i32 : i32 to vector<1x128xi32>
    %38 = arith.cmpi slt, %36, %37 : vector<1x128xi32>
    %cst_17 = arith.constant 0.000000e+00 : f32
    %cst_18 = arith.constant -1.000000e+30 : f32
    %39 = vector.broadcast %cst_17 : f32 to vector<1x128xf32>
    %40 = vector.broadcast %cst_18 : f32 to vector<1x128xf32>
    %41 = arith.select %38, %39, %40 : vector<1x128xi1>, vector<1x128xf32>
    %c0_19 = arith.constant 0 : index
    %c0_20 = arith.constant 0 : index
    %42 = vector.load %arg12[%c0_19, %c0_20] : memref<128x32xf32, #tpu.memory_space<vmem>>, vector<128x32xf32>
    %c0_21 = arith.constant 0 : index
    %c0_22 = arith.constant 0 : index
    %43 = vector.load %arg13[%c0_21, %c0_22] : memref<128x32xf32, #tpu.memory_space<vmem>>, vector<128x32xf32>
    %44 = vector.extract_strided_slice %35 {offsets = [0, 0], sizes = [8, 8], strides = [1, 1]} : vector<8x32xf32> to vector<8x8xf32>
    %45 = vector.extract_strided_slice %42 {offsets = [0, 0], sizes = [128, 8], strides = [1, 1]} : vector<128x32xf32> to vector<128x8xf32>
    %cst_23 = arith.constant dense<0.000000e+00> : vector<8x128xf32>
    %46 = tpu.matmul %44, %45, %cst_23 {dimension_numbers = #tpu.dot_dimension_numbers<[1], [1], [0], [0], [0, 0, 1, 0], [], []>} : vector<8x8xf32>, vector<128x8xf32>, vector<8x128xf32> -> vector<8x128xf32>
    %47 = vector.broadcast %41 : vector<1x128xf32> to vector<8x128xf32>
    %48 = arith.addf %46, %47 : vector<8x128xf32>
    %cst_24 = arith.constant dense<0xFF800000> : vector<8xf32>
    %49 = vector.multi_reduction <maximumf>, %48, %cst_24 [1] : vector<8x128xf32> to vector<8xf32>
    %50 = vector.shape_cast %49 : vector<8xf32> to vector<8x1xf32>
    %51 = vector.broadcast %50 : vector<8x1xf32> to vector<8x128xf32>
    %52 = arith.subf %48, %51 : vector<8x128xf32>
    %53 = math.exp %52 : vector<8x128xf32>
    %cst_25 = arith.constant dense<0.000000e+00> : vector<8xf32>
    %54 = vector.multi_reduction <add>, %53, %cst_25 [1] : vector<8x128xf32> to vector<8xf32>
    %55 = vector.shape_cast %54 : vector<8xf32> to vector<8x1xf32>
    %cst_26 = arith.constant 1.000000e+00 : f32
    %56 = vector.broadcast %cst_26 : f32 to vector<8x1xf32>
    %57 = arith.divf %56, %55 : vector<8x1xf32>
    %cst_27 = arith.constant 2.500000e-01 : f32
    %58 = vector.broadcast %cst_27 : f32 to vector<8x1xf32>
    %59 = arith.mulf %57, %58 : vector<8x1xf32>
    %60 = vector.broadcast %59 : vector<8x1xf32> to vector<8x128xf32>
    %61 = arith.mulf %53, %60 : vector<8x128xf32>
    %62 = vector.extract_strided_slice %43 {offsets = [0, 0], sizes = [128, 8], strides = [1, 1]} : vector<128x32xf32> to vector<128x8xf32>
    %cst_28 = arith.constant dense<0.000000e+00> : vector<8x8xf32>
    %63 = tpu.matmul %53, %62, %cst_28 {dimension_numbers = #tpu.dot_dimension_numbers<[1], [0], [0], [1], [0, 0, 1, 1], [], []>} : vector<8x128xf32>, vector<128x8xf32>, vector<8x8xf32> -> vector<8x8xf32>
    %64 = vector.broadcast %57 : vector<8x1xf32> to vector<8x8xf32>
    %65 = arith.mulf %63, %64 : vector<8x8xf32>
    %66 = vector.extract_strided_slice %35 {offsets = [0, 8], sizes = [8, 8], strides = [1, 1]} : vector<8x32xf32> to vector<8x8xf32>
    %67 = vector.extract_strided_slice %42 {offsets = [0, 8], sizes = [128, 8], strides = [1, 1]} : vector<128x32xf32> to vector<128x8xf32>
    %cst_29 = arith.constant dense<0.000000e+00> : vector<8x128xf32>
    %68 = tpu.matmul %66, %67, %cst_29 {dimension_numbers = #tpu.dot_dimension_numbers<[1], [1], [0], [0], [0, 0, 1, 0], [], []>} : vector<8x8xf32>, vector<128x8xf32>, vector<8x128xf32> -> vector<8x128xf32>
    %69 = vector.broadcast %41 : vector<1x128xf32> to vector<8x128xf32>
    %70 = arith.addf %68, %69 : vector<8x128xf32>
    %cst_30 = arith.constant dense<0xFF800000> : vector<8xf32>
    %71 = vector.multi_reduction <maximumf>, %70, %cst_30 [1] : vector<8x128xf32> to vector<8xf32>
    %72 = vector.shape_cast %71 : vector<8xf32> to vector<8x1xf32>
    %73 = vector.broadcast %72 : vector<8x1xf32> to vector<8x128xf32>
    %74 = arith.subf %70, %73 : vector<8x128xf32>
    %75 = math.exp %74 : vector<8x128xf32>
    %cst_31 = arith.constant dense<0.000000e+00> : vector<8xf32>
    %76 = vector.multi_reduction <add>, %75, %cst_31 [1] : vector<8x128xf32> to vector<8xf32>
    %77 = vector.shape_cast %76 : vector<8xf32> to vector<8x1xf32>
    %cst_32 = arith.constant 1.000000e+00 : f32
    %78 = vector.broadcast %cst_32 : f32 to vector<8x1xf32>
    %79 = arith.divf %78, %77 : vector<8x1xf32>
    %cst_33 = arith.constant 2.500000e-01 : f32
    %80 = vector.broadcast %cst_33 : f32 to vector<8x1xf32>
    %81 = arith.mulf %79, %80 : vector<8x1xf32>
    %82 = vector.broadcast %81 : vector<8x1xf32> to vector<8x128xf32>
    %83 = arith.mulf %75, %82 : vector<8x128xf32>
    %84 = arith.addf %61, %83 : vector<8x128xf32>
    %85 = vector.extract_strided_slice %43 {offsets = [0, 8], sizes = [128, 8], strides = [1, 1]} : vector<128x32xf32> to vector<128x8xf32>
    %cst_34 = arith.constant dense<0.000000e+00> : vector<8x8xf32>
    %86 = tpu.matmul %75, %85, %cst_34 {dimension_numbers = #tpu.dot_dimension_numbers<[1], [0], [0], [1], [0, 0, 1, 1], [], []>} : vector<8x128xf32>, vector<128x8xf32>, vector<8x8xf32> -> vector<8x8xf32>
    %87 = vector.broadcast %79 : vector<8x1xf32> to vector<8x8xf32>
    %88 = arith.mulf %86, %87 : vector<8x8xf32>
    %89 = vector.extract_strided_slice %35 {offsets = [0, 16], sizes = [8, 8], strides = [1, 1]} : vector<8x32xf32> to vector<8x8xf32>
    %90 = vector.extract_strided_slice %42 {offsets = [0, 16], sizes = [128, 8], strides = [1, 1]} : vector<128x32xf32> to vector<128x8xf32>
    %cst_35 = arith.constant dense<0.000000e+00> : vector<8x128xf32>
    %91 = tpu.matmul %89, %90, %cst_35 {dimension_numbers = #tpu.dot_dimension_numbers<[1], [1], [0], [0], [0, 0, 1, 0], [], []>} : vector<8x8xf32>, vector<128x8xf32>, vector<8x128xf32> -> vector<8x128xf32>
    %92 = vector.broadcast %41 : vector<1x128xf32> to vector<8x128xf32>
    %93 = arith.addf %91, %92 : vector<8x128xf32>
    %cst_36 = arith.constant dense<0xFF800000> : vector<8xf32>
    %94 = vector.multi_reduction <maximumf>, %93, %cst_36 [1] : vector<8x128xf32> to vector<8xf32>
    %95 = vector.shape_cast %94 : vector<8xf32> to vector<8x1xf32>
    %96 = vector.broadcast %95 : vector<8x1xf32> to vector<8x128xf32>
    %97 = arith.subf %93, %96 : vector<8x128xf32>
    %98 = math.exp %97 : vector<8x128xf32>
    %cst_37 = arith.constant dense<0.000000e+00> : vector<8xf32>
    %99 = vector.multi_reduction <add>, %98, %cst_37 [1] : vector<8x128xf32> to vector<8xf32>
    %100 = vector.shape_cast %99 : vector<8xf32> to vector<8x1xf32>
    %cst_38 = arith.constant 1.000000e+00 : f32
    %101 = vector.broadcast %cst_38 : f32 to vector<8x1xf32>
    %102 = arith.divf %101, %100 : vector<8x1xf32>
    %cst_39 = arith.constant 2.500000e-01 : f32
    %103 = vector.broadcast %cst_39 : f32 to vector<8x1xf32>
    %104 = arith.mulf %102, %103 : vector<8x1xf32>
    %105 = vector.broadcast %104 : vector<8x1xf32> to vector<8x128xf32>
    %106 = arith.mulf %98, %105 : vector<8x128xf32>
    %107 = arith.addf %84, %106 : vector<8x128xf32>
    %108 = vector.extract_strided_slice %43 {offsets = [0, 16], sizes = [128, 8], strides = [1, 1]} : vector<128x32xf32> to vector<128x8xf32>
    %cst_40 = arith.constant dense<0.000000e+00> : vector<8x8xf32>
    %109 = tpu.matmul %98, %108, %cst_40 {dimension_numbers = #tpu.dot_dimension_numbers<[1], [0], [0], [1], [0, 0, 1, 1], [], []>} : vector<8x128xf32>, vector<128x8xf32>, vector<8x8xf32> -> vector<8x8xf32>
    %110 = vector.broadcast %102 : vector<8x1xf32> to vector<8x8xf32>
    %111 = arith.mulf %109, %110 : vector<8x8xf32>
    %112 = vector.extract_strided_slice %35 {offsets = [0, 24], sizes = [8, 8], strides = [1, 1]} : vector<8x32xf32> to vector<8x8xf32>
    %113 = vector.extract_strided_slice %42 {offsets = [0, 24], sizes = [128, 8], strides = [1, 1]} : vector<128x32xf32> to vector<128x8xf32>
    %cst_41 = arith.constant dense<0.000000e+00> : vector<8x128xf32>
    %114 = tpu.matmul %112, %113, %cst_41 {dimension_numbers = #tpu.dot_dimension_numbers<[1], [1], [0], [0], [0, 0, 1, 0], [], []>} : vector<8x8xf32>, vector<128x8xf32>, vector<8x128xf32> -> vector<8x128xf32>
    %115 = vector.broadcast %41 : vector<1x128xf32> to vector<8x128xf32>
    %116 = arith.addf %114, %115 : vector<8x128xf32>
    %cst_42 = arith.constant dense<0xFF800000> : vector<8xf32>
    %117 = vector.multi_reduction <maximumf>, %116, %cst_42 [1] : vector<8x128xf32> to vector<8xf32>
    %118 = vector.shape_cast %117 : vector<8xf32> to vector<8x1xf32>
    %119 = vector.broadcast %118 : vector<8x1xf32> to vector<8x128xf32>
    %120 = arith.subf %116, %119 : vector<8x128xf32>
    %121 = math.exp %120 : vector<8x128xf32>
    %cst_43 = arith.constant dense<0.000000e+00> : vector<8xf32>
    %122 = vector.multi_reduction <add>, %121, %cst_43 [1] : vector<8x128xf32> to vector<8xf32>
    %123 = vector.shape_cast %122 : vector<8xf32> to vector<8x1xf32>
    %cst_44 = arith.constant 1.000000e+00 : f32
    %124 = vector.broadcast %cst_44 : f32 to vector<8x1xf32>
    %125 = arith.divf %124, %123 : vector<8x1xf32>
    %cst_45 = arith.constant 2.500000e-01 : f32
    %126 = vector.broadcast %cst_45 : f32 to vector<8x1xf32>
    %127 = arith.mulf %125, %126 : vector<8x1xf32>
    %128 = vector.broadcast %127 : vector<8x1xf32> to vector<8x128xf32>
    %129 = arith.mulf %121, %128 : vector<8x128xf32>
    %130 = arith.addf %107, %129 : vector<8x128xf32>
    %131 = vector.extract_strided_slice %43 {offsets = [0, 24], sizes = [128, 8], strides = [1, 1]} : vector<128x32xf32> to vector<128x8xf32>
    %cst_46 = arith.constant dense<0.000000e+00> : vector<8x8xf32>
    %132 = tpu.matmul %121, %131, %cst_46 {dimension_numbers = #tpu.dot_dimension_numbers<[1], [0], [0], [1], [0, 0, 1, 1], [], []>} : vector<8x128xf32>, vector<128x8xf32>, vector<8x8xf32> -> vector<8x8xf32>
    %133 = vector.broadcast %125 : vector<8x1xf32> to vector<8x8xf32>
    %134 = arith.mulf %132, %133 : vector<8x8xf32>
    %c0_47 = arith.constant 0 : index
    %c0_48 = arith.constant 0 : index
    %c0_49 = arith.constant 0 : index
    %135 = vector.load %arg11[%c0_47, %c0_48, %c0_49] : memref<1x8x128xf32, #tpu.memory_space<vmem>>, vector<1x8x128xf32>
    %136 = vector.shape_cast %135 : vector<1x8x128xf32> to vector<8x128xf32>
    %137 = vector.shape_cast %130 : vector<8x128xf32> to vector<1x8x128xf32>
    tpu.vector_store %arg11[%c0_47, %c0_48, %c0_49], %137 {strides = array<i32>} : memref<1x8x128xf32, #tpu.memory_space<vmem>>, vector<1x8x128xf32>,
    %138 = tpu.concatenate %65, %88, %111, %134 in 1 : vector<8x8xf32>, vector<8x8xf32>, vector<8x8xf32>, vector<8x8xf32> -> vector<8x32xf32>
    %c0_50 = arith.constant 0 : index
    %c0_51 = arith.constant 0 : index
    %139 = vector.load %arg6[%c0_50, %c0_51] : memref<32x32xf32, #tpu.memory_space<vmem>>, vector<32x32xf32>
    %cst_52 = arith.constant dense<0.000000e+00> : vector<8x32xf32>
    %140 = tpu.matmul %138, %139, %cst_52 {dimension_numbers = #tpu.dot_dimension_numbers<[1], [1], [0], [0], [0, 0, 1, 0], [], []>} : vector<8x32xf32>, vector<32x32xf32>, vector<8x32xf32> -> vector<8x32xf32>
    %c0_53 = arith.constant 0 : index
    %c0_54 = arith.constant 0 : index
    %141 = vector.load %arg7[%c0_53, %c0_54] : memref<1x32xf32, #tpu.memory_space<vmem>>, vector<1x32xf32>
    %142 = vector.broadcast %141 : vector<1x32xf32> to vector<8x32xf32>
    %143 = arith.addf %140, %142 : vector<8x32xf32>
    %144 = arith.addf %4, %143 : vector<8x32xf32>
    %c0_55 = arith.constant 0 : index
    %c0_56 = arith.constant 0 : index
    %c0_57 = arith.constant 0 : index
    %145 = vector.load %arg10[%c0_55, %c0_56, %c0_57] : memref<1x8x32xf32, #tpu.memory_space<vmem>>, vector<1x8x32xf32>
    %146 = vector.shape_cast %145 : vector<1x8x32xf32> to vector<8x32xf32>
    %147 = vector.shape_cast %144 : vector<8x32xf32> to vector<1x8x32xf32>
    tpu.vector_store %arg10[%c0_55, %c0_56, %c0_57], %147 {strides = array<i32>} : memref<1x8x32xf32, #tpu.memory_space<vmem>>, vector<1x8x32xf32>,
    return
  }
  func.func @transform_0(%arg0: i32, %arg1: i32) -> (i32, i32, i32) {
    %c0_i32 = arith.constant 0 : i32
    %c0_i32_0 = arith.constant 0 : i32
    return %arg0, %arg1, %c0_i32 : i32, i32, i32
  }
  func.func @transform_1(%arg0: i32, %arg1: i32) -> (i32, i32, i32) {
    %c0_i32 = arith.constant 0 : i32
    %c0_i32_0 = arith.constant 0 : i32
    %c0_i32_1 = arith.constant 0 : i32
    return %arg0, %c0_i32, %c0_i32_0 : i32, i32, i32
  }
  func.func @transform_2(%arg0: i32, %arg1: i32) -> (i32, i32) {
    %c0_i32 = arith.constant 0 : i32
    %c0_i32_0 = arith.constant 0 : i32
    %c0_i32_1 = arith.constant 0 : i32
    return %c0_i32, %c0_i32_0 : i32, i32
  }
  func.func @transform_3(%arg0: i32, %arg1: i32) -> (i32, i32) {
    %c0_i32 = arith.constant 0 : i32
    %c0_i32_0 = arith.constant 0 : i32
    %c0_i32_1 = arith.constant 0 : i32
    return %c0_i32, %c0_i32_0 : i32, i32
  }
  func.func @transform_4(%arg0: i32, %arg1: i32) -> (i32, i32) {
    %c0_i32 = arith.constant 0 : i32
    %c0_i32_0 = arith.constant 0 : i32
    %c0_i32_1 = arith.constant 0 : i32
    return %c0_i32, %c0_i32_0 : i32, i32
  }
  func.func @transform_5(%arg0: i32, %arg1: i32) -> (i32, i32) {
    %c0_i32 = arith.constant 0 : i32
    %c0_i32_0 = arith.constant 0 : i32
    %c0_i32_1 = arith.constant 0 : i32
    return %c0_i32, %c0_i32_0 : i32, i32
  }
  func.func @transform_6(%arg0: i32, %arg1: i32) -> (i32, i32) {
    %c0_i32 = arith.constant 0 : i32
    %c0_i32_0 = arith.constant 0 : i32
    %c0_i32_1 = arith.constant 0 : i32
    return %c0_i32, %c0_i32_0 : i32, i32
  }
  func.func @transform_7(%arg0: i32, %arg1: i32) -> (i32, i32) {
    %c0_i32 = arith.constant 0 : i32
    %c0_i32_0 = arith.constant 0 : i32
    %c0_i32_1 = arith.constant 0 : i32
    return %c0_i32, %c0_i32_0 : i32, i32
  }
  func.func @transform_8(%arg0: i32, %arg1: i32) -> (i32, i32, i32) {
    %c0_i32 = arith.constant 0 : i32
    %c0_i32_0 = arith.constant 0 : i32
    return %arg0, %arg1, %c0_i32 : i32, i32, i32
  }
  func.func @transform_9(%arg0: i32, %arg1: i32) -> (i32, i32, i32) {
    %c0_i32 = arith.constant 0 : i32
    %c0_i32_0 = arith.constant 0 : i32
    return %arg0, %arg1, %c0_i32 : i32, i32, i32
  }
}

</mosaic_0001>

<bundles_post_ra>
// kernel: tpu_custom_call.1
= control target key start
LH: loop header
LB: loop body
LE: loop exit
PB: predicated region body
PF: predicated region fallthrough
CT: control target
= control target key end

     0   :  { %s4178_s0 = inlined_call_operand.vmem [shape: f32[2,8,32], index: 0, kind: input, shape index: {}]   ;;  %s4179_s1 = inlined_call_operand.vmem [shape: f32[2,128,32], index: 1, kind: input, shape index: {}]   ;;  %s4180_s2 = inlined_call_operand.vmem [shape: f32[96,32], index: 2, kind: input, shape index: {}]   ;;  %s4181_s3 = inlined_call_operand.vmem [shape: f32[3,32], index: 3, kind: input, shape index: {}]   ;;  %s4182_s4 = inlined_call_operand.vmem [shape: f32[32,32], index: 4, kind: input, shape index: {}]   ;;  %s4183_s5 = inlined_call_operand.vmem [shape: f32[1,32], index: 5, kind: input, shape index: {}]   ;;  %s4184_s6 = inlined_call_operand.vmem [shape: f32[1,32], index: 6, kind: input, shape index: {}]   ;;  %s4185_s7 = inlined_call_operand.vmem [shape: f32[1,32], index: 7, kind: input, shape index: {}]   ;;  %s4186_s8 = inlined_call_operand.hbm [shape: f32[2,8,32], index: 8, kind: output, shape index: {0}]   ;;  %s4187_s9 = inlined_call_operand.hbm [shape: f32[2,8,128], index: 9, kind: output, shape index: {1}]  }
   0x1   :  { %4190 = sst [smem:[#allocation10_spill]] %s4178_s0 }
   0x2   :  { %4191 = sst [smem:[#allocation11_spill]] %s4179_s1 }
   0x3   :  { %4192 = sst [smem:[#allocation12_spill]] %s4180_s2 }
   0x4   :  { %4193 = sst [smem:[#allocation13_spill]] %s4181_s3 }
   0x5   :  { %15 = vsyncpa [#allocation5], 0 }
   0x6   :  { %17 = vsyncpa [#allocation5 + $0x1], 0 }
   0x7   :  { %18 = vsyncpa [#allocation7], 0 }
   0x8   :  { %20 = vsyncpa [#allocation7 + $0x1], 0  ;;  %s3225_s30 = smov 0   ;;  %s3227_s10 = smov 0  }
   0x9   :  { %s3229_s11 = smov 0   ;;  %s3231_s12 = smov 0  }
   0xa   :  { %s3233_s13 = smov 0   ;;  %s3235_s14 = smov 0  }
   0xb LB: > { %s2275_s15 = sadd.s32 4294967295, %s3162_s14   ;;  %s2276_s16 = sadd.s32 4294967294, %s3162_s14   ;;  %s3162_s14 = sphi %s3235_s14, %s26_s14   ;;  %s3158_s13 = sphi %s3233_s13, %s4206_s13   ;;  %s3154_s12 = sphi %s3231_s12, %s4205_s12   ;;  %s3150_s11 = sphi %s3229_s11, %s4204_s11   ;;  %s3146_s10 = sphi %s3227_s10, %s4203_s10   ;;  %s3142_s30 = sphi %s3225_s30, %s4202_s30  }
   0xc   : > { %s38_s17 = sadd.s32 1, %s3158_s13  ;;  %s227_s18 = sadd.s32 1, %s3150_s11 }
   0xd   : > { %p40_p0 = scmp.ge.s32.totalorder %s38_s17, 2  ;;  %p237_p1 = scmp.ne.s32.totalorder %s3150_s11, %s3146_s10 }
   0xe   : > { %p238_p2 = scmp.eq.s32.totalorder %s2275_s15, 1  ;;  %p243_p3 = scmp.ne.s32.totalorder %s3146_s10, %s3142_s30 }
   0xf   : > { %s4208_s17 = smov (%p40_p0, %s38_s17), 0  ;;  %p244_p5 = scmp.eq.s32.totalorder %s2276_s16, 1 }
  0x10   : > { %p3265_p4 = por %p238_p2, %p237_p1  ;;  %s222_s20 = ssub.s32 %s3158_s13, %s4208_s17 }
  0x11   : > { %p2279_p6 = scmp.ge.s32.totalorder %s3162_s14, 1  ;;  %p225_p7 = scmp.eq.s32.totalorder %s222_s20, 0 }
  0x12   : > { %p3272_p8 = por %p244_p5, %p243_p3  ;;  %p326_p9 = scmp.lt.s32.totalorder %s3162_s14, 3 }
  0x13   : > { %s3278_s22 = scalar_select %p225_p7, %s3150_s11, %s227_s18  }
  0x14   : > { %p327_p10 = pnand %p2279_p6, %p326_p9 }
  0x15   : > { %s4196_s2 = sld [smem:[#allocation12_spill]] (!%p327_p10)  ;;  %p374_p11 = scmp.lt.s32.totalorder (!%p327_p10), %s3154_s12, 1 }
  0x16   : > { %330 = sbr.rel (%p327_p10) target bundleno = 2655 (0xa5f), region = 52  ;;  %s4197_s0 = sld [smem:[#allocation10_spill]] (!%p327_p10) }
  0x17   : > { %s4198_s1 = sld [smem:[#allocation11_spill]] (!%p327_p10)  ;;  %s3166_s29 = smov (!%p327_p10), 120  }
  0x18   : > { %s4199_s3 = sld [smem:[#allocation13_spill]] (!%p327_p10)  ;;  %s3168_s24 = smov (!%p327_p10), 104  }
  0x19   : > { %s3170_s28 = smov (!%p327_p10), 8   ;;  %s4189_s23 = sshll.u32 (!%p327_p10), %s3154_s12, 7 }
  0x1b   : > { %v409_v0 = vld [vmem:[%s4196_s2 + $0x38] sm:$0xff]  ;;  %vm419_vm0 = vcmask 261120   ;;  %v408_v1 = vld [vmem:[%s4196_s2 + $0x30] sm:$0xff]  ;;  %s375_s16 = scalar_select %p374_p11, %s3154_s12, 1  ;;  %v407_v4 = vld [vmem:[%s4196_s2 + $0x28] sm:$0xff]  ;;  %v3164_v30 = vmov 0.0  }
  0x1c   : > { %2602 = vmatprep.subr.msk.mxu0 %vm419_vm0, %v409_v0  ;;  %v413_v2 = vld [vmem:[%s4196_s2 + $0x58] sm:$0xff]  ;;  %v412_v3 = vld [vmem:[%s4196_s2 + $0x50] sm:$0xff]  ;;  %v411_v7 = vld [vmem:[%s4196_s2 + $0x48] sm:$0xff]  ;;  %vm3165_vm1 = vmmov 0   ;;  %vm982_vm2 = vcmask 64512   ;;  %vm2023_vm4 = vcmask 130048  }
  0x1d   : > { %2603 = vmatpush3.xpose.msk.msra.mxu0 %vm419_vm0, %v409_v0  ;;  %2634 = vmatprep.subr.msk.mxu1 %vm419_vm0, %v413_v2  ;;  %s2282_s18 = sshll.u32 %s375_s16, 3  ;;  %s2415_s20 = sshll.u32 %s375_s16, 7  ;;  %v406_v9 = vld [vmem:[%s4196_s2 + $0x20] sm:$0xff]  ;;  %v854_v32 = vld [vmem:[%s4196_s2 + $0x18] sm:$0xff]  ;;  %v853_v33 = vld [vmem:[%s4196_s2 + $0x10] sm:$0xff]  ;;  %vm2025_vm5 = vcmask 195584  }
  0x1e   : > { %2604 = vmatprep.subr.msk.mxu0 %vm419_vm0, %v408_v1  ;;  %2635 = vmatpush3.xpose.msk.msra.mxu1 %vm419_vm0, %v413_v2  ;;  %s3306_s27 = scalar_lea.vmem %s4197_s0, %s2282_s18  ;;  %s3311_s15 = scalar_lea.vmem %s4198_s1, %s2415_s20  ;;  %v410_v10 = vld [vmem:[%s4196_s2 + $0x40] sm:$0xff]  ;;  %v852_v34 = vld [vmem:[%s4196_s2 + $0x8] sm:$0xff] }
  0x1f   : > { %2636 = vmatprep.subr.msk.mxu1 %vm419_vm0, %v412_v3  ;;  %v3315_v5 = vld [vmem:[%s3306_s27] sm:$0xff]  ;;  %v391_v11 = vld [vmem:[%s3311_s15 + $0x8] sm:$0xff]  ;;  %v392_v12 = vld [vmem:[%s3311_s15 + $0x10] sm:$0xff]  ;;  %s3167_s20 = smov 112   ;;  %s3172_s16 = smov 24  }
  0x20   : > { %v390_v6 = vld [vmem:[%s3311_s15] sm:$0xff]  ;;  %v821_v8 = vsel %vm419_vm0, %v3315_v5, 0.0  ;;  %v393_v13 = vld [vmem:[%s3311_s15 + $0x18] sm:$0xff]  ;;  %v395_v15 = vld [vmem:[%s3311_s15 + $0x28] sm:$0xff] }
  0x21   : > { %2605 = vmatpush3.xpose.msk.msra.mxu0 %vm419_vm0, %v408_v1  ;;  %2610 = vmatprep.mubr.msk.f32.mxu0 %vm419_vm0, %v390_v6  ;;  %v394_v14 = vld [vmem:[%s3311_s15 + $0x20] sm:$0xff]  ;;  %v396_v16 = vld [vmem:[%s3311_s15 + $0x30] sm:$0xff]  ;;  %v397_v17 = vld [vmem:[%s3311_s15 + $0x38] sm:$0xff] }
  0x22   : > { %2606 = vmatprep.subr.msk.mxu0 %vm419_vm0, %v407_v4  ;;  %822 = vadd.xlane.f32.xlu0 %v821_v8  ;;  %v398_v18 = vld [vmem:[%s3311_s15 + $0x40] sm:$0xff]  ;;  %v399_v19 = vld [vmem:[%s3311_s15 + $0x48] sm:$0xff]  ;;  %v400_v20 = vld [vmem:[%s3311_s15 + $0x50] sm:$0xff] }
  0x23   : > { %2637 = vmatpush3.xpose.msk.msra.mxu1 %vm419_vm0, %v412_v3  ;;  %2642 = vmatprep.mubr.msk.f32.mxu1 %vm419_vm0, %v390_v6  ;;  %v401_v21 = vld [vmem:[%s3311_s15 + $0x58] sm:$0xff]  ;;  %v402_v22 = vld [vmem:[%s3311_s15 + $0x60] sm:$0xff]  ;;  %v403_v23 = vld [vmem:[%s3311_s15 + $0x68] sm:$0xff] }
  0x24   : > { %2638 = vmatprep.subr.msk.mxu1 %vm419_vm0, %v411_v7  ;;  %v404_v24 = vld [vmem:[%s3311_s15 + $0x70] sm:$0xff]  ;;  %v405_v25 = vld [vmem:[%s3311_s15 + $0x78] sm:$0xff]  ;;  %v851_v35 = vld [vmem:[%s4196_s2] sm:$0xff] }
  0x25   : > { %2607 = vmatpush3.xpose.msk.msra.mxu0 %vm419_vm0, %v407_v4  ;;  %v3420_v37 = vld [vmem:[%s4199_s3 + $0x1] ss:$0 sm:$0xff]  ;;  %v3426_v41 = vld [vmem:[%s4199_s3 + $0x2] ss:$0 sm:$0xff] }
  0x26   : > { %2608 = vmatprep.subr.msk.mxu0 %vm419_vm0, %v406_v9 }
  0x27   : > { %2639 = vmatpush3.xpose.msk.msra.mxu1 %vm419_vm0, %v411_v7 }
  0x28   : > { %2640 = vmatprep.subr.msk.mxu1 %vm419_vm0, %v410_v10 }
  0x29   : > { %2609 = vmatpush3.xpose.msk.msra.mxu0 %vm419_vm0, %v406_v9 }
  0x2a   : > { %2666 = vmatprep.subr.mxu0 %v3164_v30 }
  0x2b   : > { %2641 = vmatpush3.xpose.msk.msra.mxu1 %vm419_vm0, %v410_v10 }
  0x2c   : > { %2611 = vmatmul.mubr.msk.f32.vlgmr.msra.gmra.mxu0 %vm419_vm0, %v391_v11  ;;  %2677 = vmatprep.subr.mxu1 %v3164_v30 }
  0x2d   : > { %2613 = vmatprep.mubr.msk.f32.mxu0 %vm419_vm0, %v392_v12  ;;  %2667 = vmatpush3.xpose.msk.msra.mxu0 %vm419_vm0, %v854_v32 }
  0x2e   : > { %2643 = vmatmul.mubr.msk.f32.vlgmr.msra.gmra.mxu1 %vm419_vm0, %v391_v11  ;;  %2668 = vmatprep.subr.mxu0 %v3164_v30 }
  0x2f   : > { %2645 = vmatprep.mubr.msk.f32.mxu1 %vm419_vm0, %v392_v12 }
  0x30   : > { %2614 = vmatmul.mubr.msk.f32.gmra.mxu0 %vm419_vm0, %v393_v13 }
  0x31   : > { %2616 = vmatprep.mubr.msk.f32.mxu0 %vm419_vm0, %v394_v14  ;;  %2669 = vmatpush3.xpose.msk.msra.mxu0 %vm419_vm0, %v853_v33 }
  0x32   : > { %2646 = vmatmul.mubr.msk.f32.gmra.mxu1 %vm419_vm0, %v393_v13  ;;  %2670 = vmatprep.subr.mxu0 %v3164_v30 }
  0x33   : > { %2648 = vmatprep.mubr.msk.f32.mxu1 %vm419_vm0, %v394_v14 }
  0x34   : > { %2617 = vmatmul.mubr.msk.f32.gmra.mxu0 %vm419_vm0, %v395_v15 }
  0x35   : > { %2619 = vmatprep.mubr.msk.f32.mxu0 %vm419_vm0, %v396_v16  ;;  %2671 = vmatpush3.xpose.msk.msra.mxu0 %vm419_vm0, %v852_v34 }
  0x36   : > { %2649 = vmatmul.mubr.msk.f32.gmra.mxu1 %vm419_vm0, %v395_v15  ;;  %2672 = vmatprep.subr.mxu0 %v3164_v30 }
  0x37   : > { %2651 = vmatprep.mubr.msk.f32.mxu1 %vm419_vm0, %v396_v16 }
  0x38   : > { %2620 = vmatmul.mubr.msk.f32.gmra.mxu0 %vm419_vm0, %v397_v17 }
  0x39   : > { %2622 = vmatprep.mubr.msk.f32.mxu0 %vm419_vm0, %v398_v18  ;;  %2673 = vmatpush3.xpose.msk.msra.mxu0 %vm419_vm0, %v851_v35 }
  0x3a   : > { %2652 = vmatmul.mubr.msk.f32.gmra.mxu1 %vm419_vm0, %v397_v17  ;;  %2712 = vmatprep.subr.mxu0 %v3164_v30 }
  0x3b   : > { %2654 = vmatprep.mubr.msk.f32.mxu1 %vm419_vm0, %v398_v18 }
  0x3c   : > { %2623 = vmatmul.mubr.msk.f32.gmra.mxu0 %vm419_vm0, %v399_v19 }
  0x3d   : > { %2625 = vmatprep.mubr.msk.f32.mxu0 %vm419_vm0, %v400_v20 }
  0x3e   : > { %2655 = vmatmul.mubr.msk.f32.gmra.mxu1 %vm419_vm0, %v399_v19 }
  0x3f   : > { %2657 = vmatprep.mubr.msk.f32.mxu1 %vm419_vm0, %v400_v20 }
  0x40   : > { %2626 = vmatmul.mubr.msk.f32.gmra.mxu0 %vm419_vm0, %v401_v21 }
  0x41   : > { %2628 = vmatprep.mubr.msk.f32.mxu0 %vm419_vm0, %v402_v22 }
  0x42   : > { %2658 = vmatmul.mubr.msk.f32.gmra.mxu1 %vm419_vm0, %v401_v21 }
  0x43   : > { %2660 = vmatprep.mubr.msk.f32.mxu1 %vm419_vm0, %v402_v22 }
  0x44   : > { %2629 = vmatmul.mubr.msk.f32.gmra.mxu0 %vm419_vm0, %v403_v23 }
  0x45   : > { %2631 = vmatprep.mubr.msk.f32.mxu0 %vm419_vm0, %v404_v24 }
  0x46   : > { %2661 = vmatmul.mubr.msk.f32.gmra.mxu1 %vm419_vm0, %v403_v23 }
  0x47   : > { %2663 = vmatprep.mubr.msk.f32.mxu1 %vm419_vm0, %v404_v24 }
  0x48   : > { %2632 = vmatmul.mubr.msk.f32.gmra.mxu0 %vm419_vm0, %v405_v25 }
  0x49   : > { %2674 = vmatprep.mubr.msk.f32.mxu0 %vm3165_vm1, %v3164_v30 }
  0x4a   : > { %2664 = vmatmul.mubr.msk.f32.gmra.mxu1 %vm419_vm0, %v405_v25 }
  0x4b   : > { %2709 = vmatprep.mubr.msk.f32.mxu1 %vm3165_vm1, %v3164_v30 }
  0xab   : > { %v823_v26 = vpop.xlane.xlu0 %822 }
  0xac   : > { %v825_v27 = vmul.f32 0.03125, %v823_v26 }
  0xae   : > { %v3386_v28 = vsub.f32 %v3315_v5, %v825_v27 }
  0xb0   : > { %v827_v29 = vmul.f32 %v3386_v28, %v3386_v28 }
  0xb2   : > { %v828_v31 = vsel %vm419_vm0, %v827_v29, 0.0 }
  0xb3   : > { %829 = vadd.xlane.f32.xlu0 %v828_v31 }
  0xec   : > { %v2612_v36 = vpop.f32.mrf.mxu0 }
  0xed   : > { %v552_v38 = vadd.f32 %v2612_v36, %v3420_v37 }
  0xee   : > { %v546_v39 = vpop.f32.mrf.mxu0  ;;  %v2644_v40 = vpop.f32.mrf.mxu1 }
  0xef   : > { %626 = vst.msk [vmem:[#allocation2 + $0x8] sm:$0xff] %vm419_vm0, %v552_v38  ;;  %v547_v42 = vadd.f32 %v3420_v37, %v546_v39  ;;  %v730_v43 = vadd.f32 %v2644_v40, %v3426_v41 }
  0xf0   : > { %v2615_v44 = vpop.f32.mrf.mxu0  ;;  %v724_v45 = vpop.f32.mrf.mxu1 }
  0xf1   : > { %625 = vst.msk [vmem:[#allocation2] sm:$0xff] %vm419_vm0, %v547_v42  ;;  %v562_v46 = vadd.f32 %v2615_v44, %v3420_v37  ;;  %804 = vst.msk [vmem:[#allocation3 + $0x8] sm:$0xff] %vm419_vm0, %v730_v43  ;;  %v725_v47 = vadd.f32 %v3426_v41, %v724_v45 }
  0xf2   : > { %v556_v48 = vpop.f32.mrf.mxu0  ;;  %v2647_v49 = vpop.f32.mrf.mxu1 }
  0xf3   : > { %628 = vst.msk [vmem:[#allocation2 + $0x18] sm:$0xff] %vm419_vm0, %v562_v46  ;;  %v557_v50 = vadd.f32 %v3420_v37, %v556_v48  ;;  %803 = vst.msk [vmem:[#allocation3] sm:$0xff] %vm419_vm0, %v725_v47  ;;  %v740_v51 = vadd.f32 %v2647_v49, %v3426_v41 }
  0xf4   : > { %v2618_v52 = vpop.f32.mrf.mxu0  ;;  %v734_v53 = vpop.f32.mrf.mxu1 }
  0xf5   : > { %627 = vst.msk [vmem:[#allocation2 + $0x10] sm:$0xff] %vm419_vm0, %v557_v50  ;;  %v572_v54 = vadd.f32 %v2618_v52, %v3420_v37  ;;  %806 = vst.msk [vmem:[#allocation3 + $0x18] sm:$0xff] %vm419_vm0, %v740_v51  ;;  %v735_v55 = vadd.f32 %v3426_v41, %v734_v53 }
  0xf6   : > { %v566_v56 = vpop.f32.mrf.mxu0  ;;  %v2650_v57 = vpop.f32.mrf.mxu1 }
  0xf7   : > { %630 = vst.msk [vmem:[#allocation2 + $0x28] sm:$0xff] %vm419_vm0, %v572_v54  ;;  %v567_v58 = vadd.f32 %v3420_v37, %v566_v56  ;;  %805 = vst.msk [vmem:[#allocation3 + $0x10] sm:$0xff] %vm419_vm0, %v735_v55  ;;  %v750_v59 = vadd.f32 %v2650_v57, %v3426_v41 }
  0xf8   : > { %v2621_v60 = vpop.f32.mrf.mxu0  ;;  %v744_v61 = vpop.f32.mrf.mxu1  ;;  %v3543_v51 = vld [vmem:[#allocation2] sm:$0xff] }
  0xf9   : > { %629 = vst.msk [vmem:[#allocation2 + $0x20] sm:$0xff] %vm419_vm0, %v567_v58  ;;  %v582_v62 = vadd.f32 %v2621_v60, %v3420_v37  ;;  %808 = vst.msk [vmem:[#allocation3 + $0x28] sm:$0xff] %vm419_vm0, %v750_v59  ;;  %v745_v63 = vadd.f32 %v3426_v41, %v744_v61 }
  0xfa   : > { %v576_v0 = vpop.f32.mrf.mxu0  ;;  %v2653_v1 = vpop.f32.mrf.mxu1 }
  0xfb   : > { %632 = vst.msk [vmem:[#allocation2 + $0x38] sm:$0xff] %vm419_vm0, %v582_v62  ;;  %v577_v2 = vadd.f32 %v3420_v37, %v576_v0  ;;  %807 = vst.msk [vmem:[#allocation3 + $0x20] sm:$0xff] %vm419_vm0, %v745_v63  ;;  %v760_v3 = vadd.f32 %v2653_v1, %v3426_v41  ;;  %v3587_v62 = vld [vmem:[#allocation2 + $0x18] sm:$0xff]  ;;  %v3603_v1 = vld [vmem:[#allocation2 + $0x8] sm:$0xff] }
  0xfc   : > { %v2624_v4 = vpop.f32.mrf.mxu0  ;;  %v754_v5 = vpop.f32.mrf.mxu1  ;;  %v3534_v49 = vld [vmem:[#allocation2 + $0x10] sm:$0xff] }
  0xfd   : > { %631 = vst.msk [vmem:[#allocation2 + $0x30] sm:$0xff] %vm419_vm0, %v577_v2  ;;  %v592_v6 = vadd.f32 %v2624_v4, %v3420_v37  ;;  %810 = vst.msk [vmem:[#allocation3 + $0x38] sm:$0xff] %vm419_vm0, %v760_v3  ;;  %v755_v7 = vadd.f32 %v3426_v41, %v754_v5  ;;  %v2327_v5 = vld [vmem:[%s4184_s6] ss:$0 sm:$0xff] }
  0xfe   : > { %v586_v8 = vpop.f32.mrf.mxu0  ;;  %v2656_v9 = vpop.f32.mrf.mxu1  ;;  %v3571_v56 = vld [vmem:[#allocation2 + $0x28] sm:$0xff] }
  0xff   : > { %634 = vst.msk [vmem:[#allocation2 + $0x48] sm:$0xff] %vm419_vm0, %v592_v6  ;;  %v587_v10 = vadd.f32 %v3420_v37, %v586_v8  ;;  %809 = vst.msk [vmem:[#allocation3 + $0x30] sm:$0xff] %vm419_vm0, %v755_v7  ;;  %v770_v11 = vadd.f32 %v2656_v9, %v3426_v41  ;;  %v2328_v7 = vld [vmem:[%s4185_s7] ss:$0 sm:$0xff] }
 0x100   : > { %v2627_v12 = vpop.f32.mrf.mxu0  ;;  %v764_v13 = vpop.f32.mrf.mxu1  ;;  %v3527_v48 = vld [vmem:[#allocation2 + $0x20] sm:$0xff] }
 0x101   : > { %633 = vst.msk [vmem:[#allocation2 + $0x40] sm:$0xff] %vm419_vm0, %v587_v10  ;;  %v602_v14 = vadd.f32 %v2627_v12, %v3420_v37  ;;  %812 = vst.msk [vmem:[#allocation3 + $0x48] sm:$0xff] %vm419_vm0, %v770_v11  ;;  %v765_v15 = vadd.f32 %v3426_v41, %v764_v13  ;;  %v3650_v12 = vld [vmem:[#allocation3 + $0x10] sm:$0xff]  ;;  %v3658_v13 = vld [vmem:[#allocation3 + $0x8] sm:$0xff] }
 0x102   : > { %v596_v16 = vpop.f32.mrf.mxu0  ;;  %v2659_v17 = vpop.f32.mrf.mxu1  ;;  %v3555_v53 = vld [vmem:[#allocation2 + $0x38] sm:$0xff]  ;;  %v3633_v11 = vld [vmem:[#allocation3 + $0x20] sm:$0xff] }
 0x103   : > { %636 = vst.msk [vmem:[#allocation2 + $0x58] sm:$0xff] %vm419_vm0, %v602_v14  ;;  %v597_v18 = vadd.f32 %v3420_v37, %v596_v16  ;;  %811 = vst.msk [vmem:[#allocation3 + $0x40] sm:$0xff] %vm419_vm0, %v765_v15  ;;  %v780_v19 = vadd.f32 %v2659_v17, %v3426_v41  ;;  %v3666_v14 = vld [vmem:[#allocation3] sm:$0xff] }
 0x104   : > { %v2630_v20 = vpop.f32.mrf.mxu0  ;;  %v774_v21 = vpop.f32.mrf.mxu1  ;;  %v3516_v45 = vld [vmem:[#allocation2 + $0x30] sm:$0xff]  ;;  %v3614_v3 = vld [vmem:[#allocation3 + $0x38] sm:$0xff] }
 0x105   : > { %635 = vst.msk [vmem:[#allocation2 + $0x50] sm:$0xff] %vm419_vm0, %v597_v18  ;;  %v612_v22 = vadd.f32 %v2630_v20, %v3420_v37  ;;  %814 = vst.msk [vmem:[#allocation3 + $0x58] sm:$0xff] %vm419_vm0, %v780_v19  ;;  %v775_v23 = vadd.f32 %v3426_v41, %v774_v21 }
 0x106   : > { %v606_v24 = vpop.f32.mrf.mxu0  ;;  %v2662_v25 = vpop.f32.mrf.mxu1  ;;  %v3539_v50 = vld [vmem:[#allocation2 + $0x48] sm:$0xff]  ;;  %v3628_v9 = vld [vmem:[#allocation3 + $0x30] sm:$0xff] }
 0x107   : > { %638 = vst.msk [vmem:[#allocation2 + $0x68] sm:$0xff] %vm419_vm0, %v612_v22  ;;  %v607_v26 = vadd.f32 %v3420_v37, %v606_v24  ;;  %813 = vst.msk [vmem:[#allocation3 + $0x50] sm:$0xff] %vm419_vm0, %v775_v23  ;;  %v790_v27 = vadd.f32 %v2662_v25, %v3426_v41 }
 0x108   : > { %v2633_v29 = vpop.f32.mrf.mxu0  ;;  %v784_v31 = vpop.f32.mrf.mxu1  ;;  %v3509_v44 = vld [vmem:[#allocation2 + $0x40] sm:$0xff]  ;;  %v3598_v0 = vld [vmem:[#allocation3 + $0x48] sm:$0xff] }
 0x109   : > { %637 = vst.msk [vmem:[#allocation2 + $0x60] sm:$0xff] %vm419_vm0, %v607_v26  ;;  %v622_v32 = vadd.f32 %v2633_v29, %v3420_v37  ;;  %816 = vst.msk [vmem:[#allocation3 + $0x68] sm:$0xff] %vm419_vm0, %v790_v27  ;;  %v785_v33 = vadd.f32 %v3426_v41, %v784_v31  ;;  %v3749_v26 = vld [vmem:[#allocation3 + $0x28] sm:$0xff]  ;;  %v2329_v29 = vld [vmem:[%s4199_s3] ss:$0 sm:$0xff] }
 0x10a   : > { %v616_v34 = vpop.f32.mrf.mxu0  ;;  %v2665_v35 = vpop.f32.mrf.mxu1  ;;  %v3523_v47 = vld [vmem:[#allocation2 + $0x58] sm:$0xff]  ;;  %v3607_v2 = vld [vmem:[#allocation3 + $0x40] sm:$0xff] }
 0x10b   : > { %640 = vst.msk [vmem:[#allocation2 + $0x78] sm:$0xff] %vm419_vm0, %v622_v32  ;;  %v617_v36 = vadd.f32 %v3420_v37, %v616_v34  ;;  %815 = vst.msk [vmem:[#allocation3 + $0x60] sm:$0xff] %vm419_vm0, %v785_v33  ;;  %v800_v38 = vadd.f32 %v2665_v35, %v3426_v41 }
 0x10c   : > { %v794_v39 = vpop.f32.mrf.mxu1  ;;  %v3500_v43 = vld [vmem:[#allocation2 + $0x50] sm:$0xff]  ;;  %v3582_v60 = vld [vmem:[#allocation3 + $0x58] sm:$0xff] }
 0x10d   : > { %639 = vst.msk [vmem:[#allocation2 + $0x70] sm:$0xff] %vm419_vm0, %v617_v36  ;;  %818 = vst.msk [vmem:[#allocation3 + $0x78] sm:$0xff] %vm419_vm0, %v800_v38  ;;  %v795_v40 = vadd.f32 %v3426_v41, %v794_v39 }
 0x10e   : > { %v3505_v41 = vld [vmem:[#allocation2 + $0x68] sm:$0xff]  ;;  %v3591_v63 = vld [vmem:[#allocation3 + $0x50] sm:$0xff] }
 0x10f   : > { %817 = vst.msk [vmem:[#allocation3 + $0x70] sm:$0xff] %vm419_vm0, %v795_v40 }
 0x110   : > { %v3518_v46 = vld [vmem:[#allocation2 + $0x60] sm:$0xff]  ;;  %v3566_v55 = vld [vmem:[#allocation3 + $0x68] sm:$0xff] }
 0x112   : > { %v3491_v42 = vld [vmem:[#allocation2 + $0x78] sm:$0xff]  ;;  %v3575_v57 = vld [vmem:[#allocation3 + $0x60] sm:$0xff] }
 0x113   : > { %2678 = vmatpush3.xpose.msk.msra.mxu1 %vm982_vm2, %v3491_v42 }
 0x114   : > { %v3495_v37 = vld [vmem:[#allocation2 + $0x70] sm:$0xff]  ;;  %2679 = vmatprep.subr.mxu1 %v3164_v30  ;;  %v3550_v52 = vld [vmem:[#allocation3 + $0x78] sm:$0xff] }
 0x115   : > { %1216 = vrot.lane.b32.xlu0 %v3495_v37, %s3166_s29 }
 0x116   : > { %v3559_v54 = vld [vmem:[#allocation3 + $0x70] sm:$0xff] }
 0x117   : > { %2680 = vmatpush3.xpose.msk.msra.mxu1 %vm982_vm2, %v3495_v37 }
 0x118   : > { %2681 = vmatprep.subr.mxu1 %v3164_v30 }
 0x119   : > { %1208 = vrot.lane.b32.xlu0 %v3500_v43, %s3166_s29 }
 0x11b   : > { %2682 = vmatpush3.xpose.msk.msra.mxu1 %vm982_vm2, %v3505_v41 }
 0x11c   : > { %2683 = vmatprep.subr.mxu1 %v3164_v30 }
 0x11d   : > { %1204 = vrot.lane.b32.xlu0 %v3509_v44, %s3166_s29 }
 0x11f   : > { %2684 = vmatpush3.xpose.msk.msra.mxu1 %vm982_vm2, %v3518_v46 }
 0x120   : > { %2685 = vmatprep.subr.mxu1 %v3164_v30 }
 0x121   : > { %1200 = vrot.lane.b32.xlu0 %v3516_v45, %s3166_s29 }
 0x123   : > { %2686 = vmatpush3.xpose.msk.msra.mxu1 %vm982_vm2, %v3523_v47 }
 0x124   : > { %2687 = vmatprep.subr.mxu1 %v3164_v30 }
 0x125   : > { %1196 = vrot.lane.b32.xlu0 %v3527_v48, %s3166_s29 }
 0x127   : > { %2688 = vmatpush3.xpose.msk.msra.mxu1 %vm982_vm2, %v3500_v43 }
 0x128   : > { %2689 = vmatprep.subr.mxu1 %v3164_v30 }
 0x129   : > { %1192 = vrot.lane.b32.xlu0 %v3534_v49, %s3166_s29 }
 0x12b   : > { %2690 = vmatpush3.xpose.msk.msra.mxu1 %vm982_vm2, %v3539_v50 }
 0x12c   : > { %2691 = vmatprep.subr.mxu1 %v3164_v30 }
 0x12d   : > { %1188 = vrot.lane.b32.xlu0 %v3543_v51, %s3166_s29 }
 0x12f   : > { %2692 = vmatpush3.xpose.msk.msra.mxu1 %vm982_vm2, %v3509_v44 }
 0x130   : > { %2693 = vmatprep.subr.mxu1 %v3164_v30 }
 0x131   : > { %1382 = vrot.lane.b32.xlu0 %v3550_v52, %s3166_s29 }
 0x133   : > { %2694 = vmatpush3.xpose.msk.msra.mxu1 %vm982_vm2, %v3555_v53 }
 0x134   : > { %2695 = vmatprep.subr.mxu1 %v3164_v30 }
 0x135   : > { %1380 = vrot.lane.b32.xlu0 %v3559_v54, %s3166_s29 }
 0x137   : > { %2696 = vmatpush3.xpose.msk.msra.mxu1 %vm982_vm2, %v3516_v45 }
 0x138   : > { %2697 = vmatprep.subr.mxu1 %v3164_v30 }
 0x139   : > { %1378 = vrot.lane.b32.xlu0 %v3566_v55, %s3166_s29 }
 0x13b   : > { %2698 = vmatpush3.xpose.msk.msra.mxu1 %vm982_vm2, %v3571_v56 }
 0x13c   : > { %2699 = vmatprep.subr.mxu1 %v3164_v30  ;;  %v830_v58 = vpop.xlane.xlu0 %829 }
 0x13d   : > { %1376 = vrot.lane.b32.xlu0 %v3575_v57, %s3166_s29  ;;  %v831_v59 = vmul.f32 0.03125, %v830_v58  ;;  %v946_v58 = vlaneseq }
 0x13f   : > { %2700 = vmatpush3.xpose.msk.msra.mxu1 %vm982_vm2, %v3527_v48  ;;  %v832_v61 = vadd.f32 1e-05, %v831_v59  ;;  %v947_v59 = vand.u32 127, %v946_v58 }
 0x140   : > { %2701 = vmatprep.subr.mxu1 %v3164_v30 }
 0x141   : > { %1374 = vrot.lane.b32.xlu0 %v3582_v60, %s3166_s29  ;;  %3037 = vrsqrt.f32 %v832_v61  ;;  %vm948_vm3 = vcmp.lt.s32.totalorder %v947_v59, 8  ;;  %v3169_v61 = vmov -1e+30  }
 0x143   : > { %2702 = vmatpush3.xpose.msk.msra.mxu1 %vm982_vm2, %v3587_v62 }
 0x144   : > { %2703 = vmatprep.subr.mxu1 %v3164_v30 }
 0x145   : > { %1372 = vrot.lane.b32.xlu0 %v3591_v63, %s3166_s29 }
 0x147   : > { %2704 = vmatpush3.xpose.msk.msra.mxu1 %vm982_vm2, %v3534_v49 }
 0x148   : > { %2705 = vmatprep.subr.mxu1 %v3164_v30 }
 0x149   : > { %1370 = vrot.lane.b32.xlu0 %v3598_v0, %s3166_s29 }
 0x14b   : > { %2706 = vmatpush3.xpose.msk.msra.mxu1 %vm982_vm2, %v3603_v1 }
 0x14c   : > { %2707 = vmatprep.subr.mxu1 %v3164_v30 }
 0x14d   : > { %1368 = vrot.lane.b32.xlu0 %v3607_v2, %s3166_s29 }
 0x14e   : > { %v3038_v4 = vpop.eup %3037 }
 0x14f   : > { %2708 = vmatpush3.xpose.msk.msra.mxu1 %vm982_vm2, %v3543_v51  ;;  %v834_v6 = vmul.f32 %v3038_v4, %v3386_v28  ;;  %v3642_v28 = vld [vmem:[#allocation3 + $0x18] sm:$0xff]  ;;  %v3786_v4 = vsel %vm948_vm3, 0.0, %v3169_v61 }
 0x150   : > { %2782 = vmatprep.subr.mxu1 %v3164_v30 }
 0x151   : > { %1366 = vrot.lane.b32.xlu0 %v3614_v3, %s3166_s29  ;;  %v842_v8 = vmul.f32 %v2327_v5, %v834_v6 }
 0x153   : > { %v850_v10 = vadd.f32 %v2328_v7, %v842_v8 }
 0x155   : > { %1364 = vrot.lane.b32.xlu0 %v3628_v9, %s3166_s29  ;;  %2675 = vmatmul.mubr.msk.f32.vlgmr.msra.gmra.mxu0 %vm419_vm0, %v850_v10 }
 0x156   : > { %2713 = vmatpush3.msra.mxu0 %v3550_v52  ;;  %2744 = vmatprep.mubr.msk.f32.mxu0 %vm3165_vm1, %v3164_v30 }
 0x157   : > { %2714 = vmatprep.subr.mxu0 %v3164_v30 }
 0x158   : > { %2715 = vmatpush3.msra.mxu0 %v3559_v54 }
 0x159   : > { %1360 = vrot.lane.b32.xlu0 %v3633_v11, %s3166_s29  ;;  %2716 = vmatprep.subr.mxu0 %v3164_v30 }
 0x15a   : > { %2717 = vmatpush3.msra.mxu0 %v3566_v55 }
 0x15b   : > { %2718 = vmatprep.subr.mxu0 %v3164_v30 }
 0x15c   : > { %2719 = vmatpush3.msra.mxu0 %v3575_v57 }
 0x15d   : > { %1358 = vrot.lane.b32.xlu0 %v3642_v28, %s3166_s29  ;;  %2720 = vmatprep.subr.mxu0 %v3164_v30 }
 0x15e   : > { %2721 = vmatpush3.msra.mxu0 %v3582_v60 }
 0x15f   : > { %2722 = vmatprep.subr.mxu0 %v3164_v30 }
 0x160   : > { %2723 = vmatpush3.msra.mxu0 %v3591_v63 }
 0x161   : > { %1356 = vrot.lane.b32.xlu0 %v3650_v12, %s3166_s29  ;;  %2724 = vmatprep.subr.mxu0 %v3164_v30 }
 0x162   : > { %2725 = vmatpush3.msra.mxu0 %v3598_v0 }
 0x163   : > { %2726 = vmatprep.subr.mxu0 %v3164_v30 }
 0x164   : > { %2727 = vmatpush3.msra.mxu0 %v3607_v2 }
 0x165   : > { %1354 = vrot.lane.b32.xlu0 %v3658_v13, %s3166_s29  ;;  %2728 = vmatprep.subr.mxu0 %v3164_v30 }
 0x166   : > { %2729 = vmatpush3.msra.mxu0 %v3614_v3 }
 0x167   : > { %2730 = vmatprep.subr.mxu0 %v3164_v30 }
 0x168   : > { %2731 = vmatpush3.msra.mxu0 %v3628_v9 }
 0x169   : > { %1352 = vrot.lane.b32.xlu0 %v3666_v14, %s3166_s29  ;;  %2732 = vmatprep.subr.mxu0 %v3164_v30 }
 0x16a   : > { %2733 = vmatpush3.msra.mxu0 %v3749_v26 }
 0x16b   : > { %2734 = vmatprep.subr.mxu0 %v3164_v30 }
 0x16c   : > { %2735 = vmatpush3.msra.mxu0 %v3633_v11 }
 0x16d   : > { %1501 = vrot.lane.b32.xlu0 %v3495_v37, %s3167_s20  ;;  %2736 = vmatprep.subr.mxu0 %v3164_v30 }
 0x16e   : > { %2737 = vmatpush3.msra.mxu0 %v3642_v28 }
 0x16f   : > { %2738 = vmatprep.subr.mxu0 %v3164_v30 }
 0x170   : > { %2739 = vmatpush3.msra.mxu0 %v3650_v12 }
 0x171   : > { %1497 = vrot.lane.b32.xlu0 %v3518_v46, %s3167_s20  ;;  %2740 = vmatprep.subr.mxu0 %v3164_v30 }
 0x172   : > { %2741 = vmatpush3.msra.mxu0 %v3658_v13 }
 0x173   : > { %2742 = vmatprep.subr.mxu0 %v3164_v30 }
 0x174   : > { %2743 = vmatpush3.msra.mxu0 %v3666_v14 }
 0x175   : > { %1493 = vrot.lane.b32.xlu0 %v3500_v43, %s3167_s20  ;;  %2747 = vmatprep.subr.mxu0 %v3164_v30 }
 0x179   : > { %1489 = vrot.lane.b32.xlu0 %v3509_v44, %s3167_s20 }
 0x17d   : > { %1485 = vrot.lane.b32.xlu0 %v3516_v45, %s3167_s20 }
 0x181   : > { %1481 = vrot.lane.b32.xlu0 %v3527_v48, %s3167_s20 }
 0x185   : > { %1477 = vrot.lane.b32.xlu0 %v3534_v49, %s3167_s20 }
 0x187   : > { %v3723_v15 = vpop.permute.xlu0 %1216 }
 0x189   : > { %1473 = vrot.lane.b32.xlu0 %v3543_v51, %s3167_s20 }
 0x18b   : > { %v3729_v16 = vpop.permute.xlu0 %1208 }
 0x18d   : > { %1651 = vrot.lane.b32.xlu0 %v3550_v52, %s3167_s20 }
 0x18f   : > { %v3733_v17 = vpop.permute.xlu0 %1204 }
 0x191   : > { %1649 = vrot.lane.b32.xlu0 %v3559_v54, %s3167_s20 }
 0x193   : > { %v3739_v18 = vpop.permute.xlu0 %1200 }
 0x195   : > { %1647 = vrot.lane.b32.xlu0 %v3566_v55, %s3167_s20 }
 0x197   : > { %v3743_v19 = vpop.permute.xlu0 %1196 }
 0x199   : > { %1645 = vrot.lane.b32.xlu0 %v3575_v57, %s3167_s20 }
 0x19b   : > { %v3745_v20 = vpop.permute.xlu0 %1192 }
 0x19d   : > { %1643 = vrot.lane.b32.xlu0 %v3582_v60, %s3167_s20 }
 0x19f   : > { %v3747_v21 = vpop.permute.xlu0 %1188 }
 0x1a1   : > { %1641 = vrot.lane.b32.xlu0 %v3591_v63, %s3167_s20 }
 0x1a3   : > { %v1383_v22 = vpop.permute.xlu0 %1382 }
 0x1a5   : > { %1639 = vrot.lane.b32.xlu0 %v3598_v0, %s3167_s20 }
 0x1a7   : > { %v1381_v23 = vpop.permute.xlu0 %1380 }
 0x1a9   : > { %1637 = vrot.lane.b32.xlu0 %v3607_v2, %s3167_s20 }
 0x1ab   : > { %v1379_v24 = vpop.permute.xlu0 %1378 }
 0x1ad   : > { %1635 = vrot.lane.b32.xlu0 %v3614_v3, %s3167_s20 }
 0x1af   : > { %v1377_v25 = vpop.permute.xlu0 %1376 }
 0x1b1   : > { %1633 = vrot.lane.b32.xlu0 %v3628_v9, %s3167_s20 }
 0x1b3   : > { %v1375_v27 = vpop.permute.xlu0 %1374 }
 0x1b5   : > { %1629 = vrot.lane.b32.xlu0 %v3633_v11, %s3167_s20 }
 0x1b7   : > { %v1373_v31 = vpop.permute.xlu0 %1372 }
 0x1b9   : > { %1627 = vrot.lane.b32.xlu0 %v3642_v28, %s3167_s20 }
 0x1bb   : > { %v1371_v36 = vpop.permute.xlu0 %1370 }
 0x1bd   : > { %1625 = vrot.lane.b32.xlu0 %v3650_v12, %s3167_s20 }
 0x1bf   : > { %v1369_v38 = vpop.permute.xlu0 %1368 }
 0x1c1   : > { %1623 = vrot.lane.b32.xlu0 %v3658_v13, %s3167_s20 }
 0x1c3   : > { %v1367_v39 = vpop.permute.xlu0 %1366 }
 0x1c5   : > { %1772 = vrot.lane.b32.xlu0 %v3491_v42, %s3168_s24 }
 0x1c7   : > { %v1365_v40 = vpop.permute.xlu0 %1364 }
 0x1c9   : > { %1768 = vrot.lane.b32.xlu0 %v3505_v41, %s3168_s24 }
 0x1cb   : > { %v1361_v8 = vpop.permute.xlu0 %1360 }
 0x1cd   : > { %1764 = vrot.lane.b32.xlu0 %v3523_v47, %s3168_s24 }
 0x1d1   : > { %1760 = vrot.lane.b32.xlu0 %v3539_v50, %s3168_s24 }
 0x1d5   : > { %1756 = vrot.lane.b32.xlu0 %v3555_v53, %s3168_s24 }
 0x1d9   : > { %1752 = vrot.lane.b32.xlu0 %v3571_v56, %s3168_s24 }
 0x1dd   : > { %1748 = vrot.lane.b32.xlu0 %v3587_v62, %s3168_s24 }
 0x1e1   : > { %1744 = vrot.lane.b32.xlu0 %v3603_v1, %s3168_s24 }
 0x215   : > { %v941_v32 = vpop.f32.mrf.mxu0 }
 0x216   : > { %v942_v33 = vadd.f32 %v2329_v29, %v941_v32 }
 0x217   : > { %v2676_v34 = vpop.f32.mrf.mxu0 }
 0x218   : > { %v3765_v35 = vmul.f32 0.35355338, %v942_v33 }
 0x21a   : > { %2710 = vmatmul.mubr.msk.f32.vlgmr.msra.gmra.mxu1 %vm982_vm2, %v3765_v35  ;;  %1740 = vrot.lane.b32.xlu0 %v3765_v35, %s3168_s24 }
 0x21b   : > { %2783 = vmatpush3.msra.mxu1 %v1383_v22  ;;  %2814 = vmatprep.mubr.msk.f32.mxu1 %vm3165_vm1, %v3164_v30 }
 0x21c   : > { %2784 = vmatprep.subr.mxu1 %v3164_v30 }
 0x21d   : > { %2785 = vmatpush3.msra.mxu1 %v1381_v23 }
 0x21e   : > { %1902 = vrot.lane.b32.xlu0 %v3628_v9, %s3168_s24  ;;  %2786 = vmatprep.subr.mxu1 %v3164_v30  ;;  %v1359_v9 = vpop.permute.xlu0 %1358 }
 0x21f   : > { %2787 = vmatpush3.msra.mxu1 %v1379_v24 }
 0x220   : > { %2788 = vmatprep.subr.mxu1 %v3164_v30 }
 0x221   : > { %2789 = vmatpush3.msra.mxu1 %v1377_v25 }
 0x222   : > { %2790 = vmatprep.subr.mxu1 %v3164_v30  ;;  %v1357_v10 = vpop.permute.xlu0 %1356 }
 0x223   : > { %2791 = vmatpush3.msra.mxu1 %v1375_v27 }
 0x224   : > { %2792 = vmatprep.subr.mxu1 %v3164_v30 }
 0x225   : > { %2793 = vmatpush3.msra.mxu1 %v1373_v31 }
 0x226   : > { %2794 = vmatprep.subr.mxu1 %v3164_v30  ;;  %v1355_v22 = vpop.permute.xlu0 %1354 }
 0x227   : > { %2795 = vmatpush3.msra.mxu1 %v1371_v36 }
 0x228   : > { %2796 = vmatprep.subr.mxu1 %v3164_v30 }
 0x229   : > { %2797 = vmatpush3.msra.mxu1 %v1369_v38 }
 0x22a   : > { %2798 = vmatprep.subr.mxu1 %v3164_v30  ;;  %v1353_v23 = vpop.permute.xlu0 %1352 }
 0x22b   : > { %2799 = vmatpush3.msra.mxu1 %v1367_v39 }
 0x22c   : > { %2800 = vmatprep.subr.mxu1 %v3164_v30 }
 0x22d   : > { %2801 = vmatpush3.msra.mxu1 %v1365_v40 }
 0x22e   : > { %2802 = vmatprep.subr.mxu1 %v3164_v30  ;;  %v3811_v24 = vpop.permute.xlu0 %1501 }
 0x232   : > { %v3813_v32 = vpop.permute.xlu0 %1497 }
 0x236   : > { %v3815_v34 = vpop.permute.xlu0 %1493 }
 0x23a   : > { %v3817_v39 = vpop.permute.xlu0 %1489 }
 0x23e   : > { %v3826_v59 = vpop.permute.xlu0 %1485 }
 0x2da   : > { %v1100_v5 = vpop.f32.mrf.mxu1 }
 0x2db   : > { %v1101_v6 = vadd.f32 %v1100_v5, %v3786_v4 }
 0x2dc   : > { %v2711_v7 = vpop.f32.mrf.mxu1 }
 0x2dd   : > { %1104 = vmax.xlane.f32.xlu1 %v1101_v6 }
 0x2ee   : > { %1218 = vrot.lane.b32.xlu1 %v3491_v42, %s3166_s29 }
 0x2f2   : > { %1214 = vrot.lane.b32.xlu1 %v3505_v41, %s3166_s29 }
 0x2f6   : > { %1212 = vrot.lane.b32.xlu1 %v3518_v46, %s3166_s29 }
 0x2fa   : > { %1210 = vrot.lane.b32.xlu1 %v3523_v47, %s3166_s29 }
 0x2fe   : > { %1206 = vrot.lane.b32.xlu1 %v3539_v50, %s3166_s29 }
 0x302   : > { %1202 = vrot.lane.b32.xlu1 %v3555_v53, %s3166_s29 }
 0x306   : > { %1198 = vrot.lane.b32.xlu1 %v3571_v56, %s3166_s29 }
 0x30a   : > { %1194 = vrot.lane.b32.xlu1 %v3587_v62, %s3166_s29 }
 0x30e   : > { %1190 = vrot.lane.b32.xlu1 %v3603_v1, %s3166_s29 }
 0x312   : > { %1186 = vrot.lane.b32.xlu1 %v3765_v35, %s3166_s29 }
 0x316   : > { %1362 = vrot.lane.b32.xlu1 %v3749_v26, %s3166_s29  ;;  %s3171_s29 = smov 16  }
 0x366   : > { %v1105_v25 = vpop.xlane.xlu1 %1104 }
 0x367   : > { %v1106_v27 = vsub.f32 %v1101_v6, %v1105_v25  ;;  %v3832_v6 = vpop.permute.xlu0 %1481 }
 0x369   : > { %v1107_v29 = vmul.f32 1.442695, %v1106_v27 }
 0x36a   : > { %v1219_v31 = vpop.permute.xlu1 %1218 }
 0x36b   : > { %3039 = vpow2.f32 %v1107_v29  ;;  %v3837_v25 = vpop.permute.xlu0 %1477 }
 0x36e   : > { %v1215_v33 = vpop.permute.xlu1 %1214 }
 0x36f   : > { %v3843_v29 = vpop.permute.xlu0 %1473 }
 0x372   : > { %v1213_v36 = vpop.permute.xlu1 %1212 }
 0x376   : > { %v1211_v38 = vpop.permute.xlu1 %1210 }
 0x378   : > { %v3819_v40 = vpop.eup %3039 }
 0x379   : > { %2745 = vmatmul.mubr.f32.vlgmr.msra.gmra.mxu0 %v3819_v40 }
 0x37a   : > { %2748 = vmatpush3.xpose.msk.msra.mxu0 %vm982_vm2, %v1219_v31  ;;  %v1207_v58 = vpop.permute.xlu1 %1206  ;;  %2779 = vmatprep.mubr.msk.f32.mxu0 %vm3165_vm1, %v3164_v30 }
 0x37b   : > { %2749 = vmatprep.subr.mxu0 %v3164_v30 }
 0x37e   : > { %2750 = vmatpush3.xpose.msk.msra.mxu0 %vm982_vm2, %v3723_v15  ;;  %v1203_v61 = vpop.permute.xlu1 %1202 }
 0x37f   : > { %2751 = vmatprep.subr.mxu0 %v3164_v30 }
 0x382   : > { %2752 = vmatpush3.xpose.msk.msra.mxu0 %vm982_vm2, %v1215_v33  ;;  %v1199_v5 = vpop.permute.xlu1 %1198  ;;  %v1652_v33 = vpop.permute.xlu0 %1651 }
 0x383   : > { %2753 = vmatprep.subr.mxu0 %v3164_v30 }
 0x386   : > { %2754 = vmatpush3.xpose.msk.msra.mxu0 %vm982_vm2, %v1213_v36  ;;  %v1195_v7 = vpop.permute.xlu1 %1194 }
 0x387   : > { %2755 = vmatprep.subr.mxu0 %v3164_v30 }
 0x38a   : > { %2756 = vmatpush3.xpose.msk.msra.mxu0 %vm982_vm2, %v1211_v38  ;;  %v1191_v15 = vpop.permute.xlu1 %1190 }
 0x38b   : > { %2757 = vmatprep.subr.mxu0 %v3164_v30 }
 0x38e   : > { %2758 = vmatpush3.xpose.msk.msra.mxu0 %vm982_vm2, %v3729_v16  ;;  %v1187_v27 = vpop.permute.xlu1 %1186  ;;  %v1650_v16 = vpop.permute.xlu0 %1649 }
 0x38f   : > { %2759 = vmatprep.subr.mxu0 %v3164_v30 }
 0x392   : > { %2760 = vmatpush3.xpose.msk.msra.mxu0 %vm982_vm2, %v1207_v58  ;;  %v1363_v31 = vpop.permute.xlu1 %1362 }
 0x393   : > { %2803 = vmatpush3.msra.mxu1 %v1363_v31  ;;  %2761 = vmatprep.subr.mxu0 %v3164_v30 }
 0x394   : > { %2804 = vmatprep.subr.mxu1 %v3164_v30 }
 0x395   : > { %2805 = vmatpush3.msra.mxu1 %v1361_v8 }
 0x396   : > { %2762 = vmatpush3.xpose.msk.msra.mxu0 %vm982_vm2, %v3733_v17  ;;  %2806 = vmatprep.subr.mxu1 %v3164_v30  ;;  %v1648_v17 = vpop.permute.xlu0 %1647 }
 0x397   : > { %2807 = vmatpush3.msra.mxu1 %v1359_v9  ;;  %2763 = vmatprep.subr.mxu0 %v3164_v30 }
 0x398   : > { %2808 = vmatprep.subr.mxu1 %v3164_v30 }
 0x399   : > { %2809 = vmatpush3.msra.mxu1 %v1357_v10 }
 0x39a   : > { %2764 = vmatpush3.xpose.msk.msra.mxu0 %vm982_vm2, %v1203_v61  ;;  %2810 = vmatprep.subr.mxu1 %v3164_v30  ;;  %v1646_v8 = vpop.permute.xlu0 %1645 }
 0x39b   : > { %2811 = vmatpush3.msra.mxu1 %v1355_v22  ;;  %2765 = vmatprep.subr.mxu0 %v3164_v30 }
 0x39c   : > { %2812 = vmatprep.subr.mxu1 %v3164_v30 }
 0x39d   : > { %2813 = vmatpush3.msra.mxu1 %v1353_v23 }
 0x39e   : > { %2766 = vmatpush3.xpose.msk.msra.mxu0 %vm982_vm2, %v3739_v18  ;;  %2817 = vmatprep.subr.mxu1 %v3164_v30  ;;  %v1644_v18 = vpop.permute.xlu0 %1643 }
 0x39f   : > { %2767 = vmatprep.subr.mxu0 %v3164_v30 }
 0x3a2   : > { %2768 = vmatpush3.xpose.msk.msra.mxu0 %vm982_vm2, %v1199_v5  ;;  %v1642_v9 = vpop.permute.xlu0 %1641 }
 0x3a3   : > { %2769 = vmatprep.subr.mxu0 %v3164_v30 }
 0x3a6   : > { %2770 = vmatpush3.xpose.msk.msra.mxu0 %vm982_vm2, %v3743_v19  ;;  %v1640_v19 = vpop.permute.xlu0 %1639 }
 0x3a7   : > { %2771 = vmatprep.subr.mxu0 %v3164_v30 }
 0x3aa   : > { %2772 = vmatpush3.xpose.msk.msra.mxu0 %vm982_vm2, %v1195_v7 }
 0x3ab   : > { %2773 = vmatprep.subr.mxu0 %v3164_v30 }
 0x3ae   : > { %2774 = vmatpush3.xpose.msk.msra.mxu0 %vm982_vm2, %v3745_v20  ;;  %v1638_v20 = vpop.permute.xlu0 %1637 }
 0x3af   : > { %2775 = vmatprep.subr.mxu0 %v3164_v30 }
 0x3b2   : > { %2776 = vmatpush3.xpose.msk.msra.mxu0 %vm982_vm2, %v1191_v15 }
 0x3b3   : > { %2777 = vmatprep.subr.mxu0 %v3164_v30 }
 0x3b6   : > { %2778 = vmatpush3.xpose.msk.msra.mxu0 %vm982_vm2, %v3747_v21  ;;  %v1636_v21 = vpop.permute.xlu0 %1635 }
 0x3b7   : > { %2852 = vmatprep.subr.mxu0 %v3164_v30 }
 0x3b9   : > { %2780 = vmatmul.mubr.msk.f32.vlgmr.msra.gmra.mxu0 %vm982_vm2, %v1187_v27 }
 0x3ba   : > { %2853 = vmatpush3.msra.mxu0 %v1652_v33  ;;  %2884 = vmatprep.mubr.msk.f32.mxu0 %vm3165_vm1, %v3164_v30  ;;  %v1634_v10 = vpop.permute.xlu0 %1633 }
 0x3bb   : > { %2854 = vmatprep.subr.mxu0 %v3164_v30 }
 0x3bc   : > { %2855 = vmatpush3.msra.mxu0 %v1650_v16 }
 0x3bd   : > { %2856 = vmatprep.subr.mxu0 %v3164_v30 }
 0x3be   : > { %2857 = vmatpush3.msra.mxu0 %v1648_v17  ;;  %v1630_v7 = vpop.permute.xlu0 %1629 }
 0x3bf   : > { %2858 = vmatprep.subr.mxu0 %v3164_v30 }
 0x3c0   : > { %2859 = vmatpush3.msra.mxu0 %v1646_v8 }
 0x3c1   : > { %2860 = vmatprep.subr.mxu0 %v3164_v30 }
 0x3c2   : > { %2861 = vmatpush3.msra.mxu0 %v1644_v18  ;;  %v1628_v27 = vpop.permute.xlu0 %1627 }
 0x3c3   : > { %2862 = vmatprep.subr.mxu0 %v3164_v30 }
 0x3c4   : > { %2863 = vmatpush3.msra.mxu0 %v1642_v9 }
 0x3c5   : > { %2864 = vmatprep.subr.mxu0 %v3164_v30 }
 0x3c6   : > { %2865 = vmatpush3.msra.mxu0 %v1640_v19  ;;  %v1626_v33 = vpop.permute.xlu0 %1625 }
 0x3c7   : > { %2866 = vmatprep.subr.mxu0 %v3164_v30 }
 0x3c8   : > { %2867 = vmatpush3.msra.mxu0 %v1638_v20 }
 0x3c9   : > { %2868 = vmatprep.subr.mxu0 %v3164_v30 }
 0x3ca   : > { %2869 = vmatpush3.msra.mxu0 %v1636_v21 }
 0x3cb   : > { %2870 = vmatprep.subr.mxu0 %v3164_v30 }
 0x3cc   : > { %2871 = vmatpush3.msra.mxu0 %v1634_v10 }
 0x3cd   : > { %2872 = vmatprep.subr.mxu0 %v3164_v30 }
 0x439   : > { %v3890_v22 = vpop.f32.mrf.mxu0 }
 0x43b   : > { %v2746_v23 = vpop.f32.mrf.mxu0 }
 0x479   : > { %v1320_v36 = vpop.f32.mrf.mxu0 }
 0x47a   : > { %v1321_v38 = vadd.f32 %v1320_v36, %v3786_v4 }
 0x47b   : > { %v2781_v58 = vpop.f32.mrf.mxu0 }
 0x47c   : > { %1324 = vmax.xlane.f32.xlu1 %v1321_v38 }
 0x48d   : > { %1503 = vrot.lane.b32.xlu1 %v3491_v42, %s3167_s20 }
 0x491   : > { %1499 = vrot.lane.b32.xlu1 %v3505_v41, %s3167_s20 }
 0x495   : > { %1495 = vrot.lane.b32.xlu1 %v3523_v47, %s3167_s20 }
 0x499   : > { %1491 = vrot.lane.b32.xlu1 %v3539_v50, %s3167_s20 }
 0x49d   : > { %1487 = vrot.lane.b32.xlu1 %v3555_v53, %s3167_s20 }
 0x4a1   : > { %1483 = vrot.lane.b32.xlu1 %v3571_v56, %s3167_s20 }
 0x4a5   : > { %1479 = vrot.lane.b32.xlu1 %v3587_v62, %s3167_s20 }
 0x4a9   : > { %1475 = vrot.lane.b32.xlu1 %v3603_v1, %s3167_s20 }
 0x4ad   : > { %1471 = vrot.lane.b32.xlu1 %v3765_v35, %s3167_s20 }
 0x4b1   : > { %1631 = vrot.lane.b32.xlu1 %v3749_v26, %s3167_s20 }
 0x4b5   : > { %1621 = vrot.lane.b32.xlu1 %v3666_v14, %s3167_s20 }
 0x505   : > { %v1325_v42 = vpop.xlane.xlu1 %1324 }
 0x506   : > { %v1326_v41 = vsub.f32 %v1321_v38, %v1325_v42 }
 0x508   : > { %v1327_v47 = vmul.f32 1.442695, %v1326_v41 }
 0x509   : > { %v1504_v50 = vpop.permute.xlu1 %1503 }
 0x50a   : > { %3041 = vpow2.f32 %v1327_v47 }
 0x50d   : > { %v1500_v53 = vpop.permute.xlu1 %1499 }
 0x511   : > { %v1496_v56 = vpop.permute.xlu1 %1495 }
 0x515   : > { %v1492_v62 = vpop.permute.xlu1 %1491 }
 0x517   : > { %v3915_v61 = vpop.eup %3041 }
 0x518   : > { %2815 = vmatmul.mubr.f32.vlgmr.msra.gmra.mxu1 %v3915_v61 }
 0x519   : > { %2818 = vmatpush3.xpose.msk.msra.mxu1 %vm982_vm2, %v1504_v50  ;;  %v1488_v1 = vpop.permute.xlu1 %1487  ;;  %2849 = vmatprep.mubr.msk.f32.mxu1 %vm3165_vm1, %v3164_v30 }
 0x51a   : > { %2819 = vmatprep.subr.mxu1 %v3164_v30 }
 0x51d   : > { %2820 = vmatpush3.xpose.msk.msra.mxu1 %vm982_vm2, %v3811_v24  ;;  %v1484_v35 = vpop.permute.xlu1 %1483 }
 0x51e   : > { %2821 = vmatprep.subr.mxu1 %v3164_v30 }
 0x521   : > { %2822 = vmatpush3.xpose.msk.msra.mxu1 %vm982_vm2, %v1500_v53  ;;  %v1480_v5 = vpop.permute.xlu1 %1479 }
 0x522   : > { %2823 = vmatprep.subr.mxu1 %v3164_v30 }
 0x525   : > { %2824 = vmatpush3.xpose.msk.msra.mxu1 %vm982_vm2, %v3813_v32  ;;  %v1476_v15 = vpop.permute.xlu1 %1475  ;;  %v1624_v32 = vpop.permute.xlu0 %1623 }
 0x526   : > { %2825 = vmatprep.subr.mxu1 %v3164_v30 }
 0x529   : > { %2826 = vmatpush3.xpose.msk.msra.mxu1 %vm982_vm2, %v1496_v56  ;;  %v1472_v31 = vpop.permute.xlu1 %1471 }
 0x52a   : > { %2827 = vmatprep.subr.mxu1 %v3164_v30 }
 0x52d   : > { %2828 = vmatpush3.xpose.msk.msra.mxu1 %vm982_vm2, %v3815_v34  ;;  %v1632_v24 = vpop.permute.xlu1 %1631 }
 0x52e   : > { %2873 = vmatpush3.msra.mxu0 %v1632_v24  ;;  %2829 = vmatprep.subr.mxu1 %v3164_v30 }
 0x52f   : > { %2874 = vmatprep.subr.mxu0 %v3164_v30 }
 0x530   : > { %2875 = vmatpush3.msra.mxu0 %v1630_v7 }
 0x531   : > { %2830 = vmatpush3.xpose.msk.msra.mxu1 %vm982_vm2, %v1492_v62  ;;  %2876 = vmatprep.subr.mxu0 %v3164_v30  ;;  %v1622_v34 = vpop.permute.xlu1 %1621 }
 0x532   : > { %2877 = vmatpush3.msra.mxu0 %v1628_v27  ;;  %2831 = vmatprep.subr.mxu1 %v3164_v30 }
 0x533   : > { %2878 = vmatprep.subr.mxu0 %v3164_v30 }
 0x534   : > { %2879 = vmatpush3.msra.mxu0 %v1626_v33 }
 0x535   : > { %2832 = vmatpush3.xpose.msk.msra.mxu1 %vm982_vm2, %v3817_v39  ;;  %2880 = vmatprep.subr.mxu0 %v3164_v30 }
 0x536   : > { %2881 = vmatpush3.msra.mxu0 %v1624_v32  ;;  %2833 = vmatprep.subr.mxu1 %v3164_v30 }
 0x537   : > { %2882 = vmatprep.subr.mxu0 %v3164_v30 }
 0x538   : > { %2883 = vmatpush3.msra.mxu0 %v1622_v34 }
 0x539   : > { %2834 = vmatpush3.xpose.msk.msra.mxu1 %vm982_vm2, %v1488_v1  ;;  %2887 = vmatprep.subr.mxu0 %v3164_v30 }
 0x53a   : > { %2835 = vmatprep.subr.mxu1 %v3164_v30 }
 0x53d   : > { %2836 = vmatpush3.xpose.msk.msra.mxu1 %vm982_vm2, %v3826_v59 }
 0x53e   : > { %2837 = vmatprep.subr.mxu1 %v3164_v30 }
 0x541   : > { %2838 = vmatpush3.xpose.msk.msra.mxu1 %vm982_vm2, %v1484_v35 }
 0x542   : > { %2839 = vmatprep.subr.mxu1 %v3164_v30 }
 0x545   : > { %2840 = vmatpush3.xpose.msk.msra.mxu1 %vm982_vm2, %v3832_v6 }
 0x546   : > { %2841 = vmatprep.subr.mxu1 %v3164_v30 }
 0x549   : > { %2842 = vmatpush3.xpose.msk.msra.mxu1 %vm982_vm2, %v1480_v5 }
 0x54a   : > { %2843 = vmatprep.subr.mxu1 %v3164_v30 }
 0x54d   : > { %2844 = vmatpush3.xpose.msk.msra.mxu1 %vm982_vm2, %v3837_v25 }
 0x54e   : > { %2845 = vmatprep.subr.mxu1 %v3164_v30 }
 0x551   : > { %2846 = vmatpush3.xpose.msk.msra.mxu1 %vm982_vm2, %v1476_v15 }
 0x552   : > { %2847 = vmatprep.subr.mxu1 %v3164_v30 }
 0x555   : > { %2848 = vmatpush3.xpose.msk.msra.mxu1 %vm982_vm2, %v3843_v29 }
 0x556   : > { %2922 = vmatprep.subr.mxu1 %v3164_v30 }
 0x558   : > { %2850 = vmatmul.mubr.msk.f32.vlgmr.msra.gmra.mxu1 %vm982_vm2, %v1472_v31 }
 0x559   : > { %2954 = vmatprep.mubr.msk.f32.mxu1 %vm3165_vm1, %v3164_v30 }
 0x5d8   : > { %v3969_v39 = vpop.f32.mrf.mxu1 }
 0x5da   : > { %v2816_v59 = vpop.f32.mrf.mxu1 }
 0x618   : > { %v1605_v6 = vpop.f32.mrf.mxu1 }
 0x619   : > { %v1606_v25 = vadd.f32 %v1605_v6, %v3786_v4 }
 0x61a   : > { %v2851_v16 = vpop.f32.mrf.mxu1 }
 0x61b   : > { %1609 = vmax.xlane.f32.xlu1 %v1606_v25 }
 0x62c   : > { %1770 = vrot.lane.b32.xlu1 %v3495_v37, %s3168_s24 }
 0x630   : > { %1766 = vrot.lane.b32.xlu1 %v3518_v46, %s3168_s24 }
 0x634   : > { %1762 = vrot.lane.b32.xlu1 %v3500_v43, %s3168_s24 }
 0x638   : > { %1758 = vrot.lane.b32.xlu1 %v3509_v44, %s3168_s24 }
 0x63c   : > { %1754 = vrot.lane.b32.xlu1 %v3516_v45, %s3168_s24 }
 0x640   : > { %1750 = vrot.lane.b32.xlu1 %v3527_v48, %s3168_s24 }
 0x644   : > { %1746 = vrot.lane.b32.xlu1 %v3534_v49, %s3168_s24 }
 0x648   : > { %1742 = vrot.lane.b32.xlu1 %v3543_v51, %s3168_s24 }
 0x64c   : > { %1920 = vrot.lane.b32.xlu1 %v3550_v52, %s3168_s24  ;;  %v1773_v52 = vpop.permute.xlu0 %1772 }
 0x650   : > { %1918 = vrot.lane.b32.xlu1 %v3559_v54, %s3168_s24 }
 0x654   : > { %1916 = vrot.lane.b32.xlu1 %v3566_v55, %s3168_s24 }
 0x658   : > { %1914 = vrot.lane.b32.xlu1 %v3575_v57, %s3168_s24  ;;  %v1769_v57 = vpop.permute.xlu0 %1768 }
 0x65c   : > { %1912 = vrot.lane.b32.xlu1 %v3582_v60, %s3168_s24 }
 0x660   : > { %1910 = vrot.lane.b32.xlu1 %v3591_v63, %s3168_s24  ;;  %v1765_v63 = vpop.permute.xlu0 %1764 }
 0x664   : > { %1908 = vrot.lane.b32.xlu1 %v3598_v0, %s3168_s24 }
 0x668   : > { %1906 = vrot.lane.b32.xlu1 %v3607_v2, %s3168_s24 }
 0x66c   : > { %1904 = vrot.lane.b32.xlu1 %v3614_v3, %s3168_s24  ;;  %v1761_v3 = vpop.permute.xlu0 %1760 }
 0x670   : > { %1900 = vrot.lane.b32.xlu1 %v3749_v26, %s3168_s24 }
 0x674   : > { %1898 = vrot.lane.b32.xlu1 %v3633_v11, %s3168_s24 }
 0x678   : > { %1896 = vrot.lane.b32.xlu1 %v3642_v28, %s3168_s24  ;;  %v1757_v28 = vpop.permute.xlu0 %1756 }
 0x67c   : > { %1894 = vrot.lane.b32.xlu1 %v3650_v12, %s3168_s24  ;;  %v1753_v26 = vpop.permute.xlu0 %1752 }
 0x680   : > { %1892 = vrot.lane.b32.xlu1 %v3658_v13, %s3168_s24  ;;  %v1749_v17 = vpop.permute.xlu0 %1748 }
 0x684   : > { %v1745_v9 = vpop.permute.xlu0 %1744 }
 0x688   : > { %v1741_v20 = vpop.permute.xlu0 %1740 }
 0x68c   : > { %v1903_v10 = vpop.permute.xlu0 %1902 }
 0x6a4   : > { %1329 = vadd.xlane.f32.xlu1 %v3915_v61  ;;  %v1610_v37 = vpop.xlane.xlu1 %1609 }
 0x6a5   : > { %v1611_v43 = vsub.f32 %v1606_v25, %v1610_v37 }
 0x6a7   : > { %v1612_v44 = vmul.f32 1.442695, %v1611_v43 }
 0x6a8   : > { %1109 = vadd.xlane.f32.xlu1 %v3819_v40  ;;  %v1771_v45 = vpop.permute.xlu1 %1770 }
 0x6a9   : > { %3043 = vpow2.f32 %v1612_v44  ;;  %v2030_v44 = vld [vmem:[%s4182_s4 + $0x18] sm:$0xff] }
 0x6ac   : > { %v1767_v46 = vpop.permute.xlu1 %1766 }
 0x6b0   : > { %v1763_v48 = vpop.permute.xlu1 %1762 }
 0x6b4   : > { %v1759_v49 = vpop.permute.xlu1 %1758 }
 0x6b6   : > { %v4018_v51 = vpop.eup %3043 }
 0x6b7   : > { %2885 = vmatmul.mubr.f32.vlgmr.msra.gmra.mxu0 %v4018_v51 }
 0x6b8   : > { %2888 = vmatpush3.xpose.msk.msra.mxu0 %vm982_vm2, %v1773_v52  ;;  %v1755_v54 = vpop.permute.xlu1 %1754  ;;  %2919 = vmatprep.mubr.msk.f32.mxu0 %vm3165_vm1, %v3164_v30 }
 0x6b9   : > { %2889 = vmatprep.subr.mxu0 %v3164_v30 }
 0x6bc   : > { %2890 = vmatpush3.xpose.msk.msra.mxu0 %vm982_vm2, %v1771_v45  ;;  %v1751_v55 = vpop.permute.xlu1 %1750  ;;  %v2027_v45 = vld [vmem:[%s4182_s4] sm:$0xff] }
 0x6bd   : > { %2891 = vmatprep.subr.mxu0 %v3164_v30 }
 0x6c0   : > { %2892 = vmatpush3.xpose.msk.msra.mxu0 %vm982_vm2, %v1769_v57  ;;  %v1747_v60 = vpop.permute.xlu1 %1746 }
 0x6c1   : > { %2893 = vmatprep.subr.mxu0 %v3164_v30 }
 0x6c4   : > { %2894 = vmatpush3.xpose.msk.msra.mxu0 %vm982_vm2, %v1767_v46  ;;  %v4030_v0 = vpop.permute.xlu1 %1742 }
 0x6c5   : > { %2895 = vmatprep.subr.mxu0 %v3164_v30 }
 0x6c8   : > { %2896 = vmatpush3.xpose.msk.msra.mxu0 %vm982_vm2, %v1765_v63  ;;  %v1921_v2 = vpop.permute.xlu1 %1920 }
 0x6c9   : > { %2923 = vmatpush3.msra.mxu1 %v1921_v2  ;;  %2897 = vmatprep.subr.mxu0 %v3164_v30 }
 0x6ca   : > { %2924 = vmatprep.subr.mxu1 %v3164_v30 }
 0x6cc   : > { %2898 = vmatpush3.xpose.msk.msra.mxu0 %vm982_vm2, %v1763_v48  ;;  %v1919_v11 = vpop.permute.xlu1 %1918 }
 0x6cd   : > { %2925 = vmatpush3.msra.mxu1 %v1919_v11  ;;  %2899 = vmatprep.subr.mxu0 %v3164_v30 }
 0x6ce   : > { %2926 = vmatprep.subr.mxu1 %v3164_v30 }
 0x6d0   : > { %2900 = vmatpush3.xpose.msk.msra.mxu0 %vm982_vm2, %v1761_v3  ;;  %v1917_v12 = vpop.permute.xlu1 %1916 }
 0x6d1   : > { %2927 = vmatpush3.msra.mxu1 %v1917_v12  ;;  %2901 = vmatprep.subr.mxu0 %v3164_v30 }
 0x6d2   : > { %2928 = vmatprep.subr.mxu1 %v3164_v30 }
 0x6d4   : > { %2902 = vmatpush3.xpose.msk.msra.mxu0 %vm982_vm2, %v1759_v49  ;;  %v1915_v13 = vpop.permute.xlu1 %1914 }
 0x6d5   : > { %2929 = vmatpush3.msra.mxu1 %v1915_v13  ;;  %2903 = vmatprep.subr.mxu0 %v3164_v30 }
 0x6d6   : > { %2930 = vmatprep.subr.mxu1 %v3164_v30 }
 0x6d8   : > { %2904 = vmatpush3.xpose.msk.msra.mxu0 %vm982_vm2, %v1757_v28  ;;  %v1913_v29 = vpop.permute.xlu1 %1912 }
 0x6d9   : > { %2931 = vmatpush3.msra.mxu1 %v1913_v29  ;;  %2905 = vmatprep.subr.mxu0 %v3164_v30 }
 0x6da   : > { %2932 = vmatprep.subr.mxu1 %v3164_v30 }
 0x6dc   : > { %2906 = vmatpush3.xpose.msk.msra.mxu0 %vm982_vm2, %v1755_v54  ;;  %v1911_v8 = vpop.permute.xlu1 %1910 }
 0x6dd   : > { %2933 = vmatpush3.msra.mxu1 %v1911_v8  ;;  %2907 = vmatprep.subr.mxu0 %v3164_v30 }
 0x6de   : > { %2934 = vmatprep.subr.mxu1 %v3164_v30 }
 0x6e0   : > { %2908 = vmatpush3.xpose.msk.msra.mxu0 %vm982_vm2, %v1753_v26  ;;  %v1909_v18 = vpop.permute.xlu1 %1908 }
 0x6e1   : > { %2935 = vmatpush3.msra.mxu1 %v1909_v18  ;;  %2909 = vmatprep.subr.mxu0 %v3164_v30 }
 0x6e2   : > { %2936 = vmatprep.subr.mxu1 %v3164_v30 }
 0x6e4   : > { %2910 = vmatpush3.xpose.msk.msra.mxu0 %vm982_vm2, %v1751_v55  ;;  %v1907_v19 = vpop.permute.xlu1 %1906 }
 0x6e5   : > { %2937 = vmatpush3.msra.mxu1 %v1907_v19  ;;  %2911 = vmatprep.subr.mxu0 %v3164_v30 }
 0x6e6   : > { %2938 = vmatprep.subr.mxu1 %v3164_v30 }
 0x6e8   : > { %2912 = vmatpush3.xpose.msk.msra.mxu0 %vm982_vm2, %v1749_v17  ;;  %v1905_v21 = vpop.permute.xlu1 %1904 }
 0x6e9   : > { %2939 = vmatpush3.msra.mxu1 %v1905_v21  ;;  %2913 = vmatprep.subr.mxu0 %v3164_v30 }
 0x6ea   : > { %2940 = vmatprep.subr.mxu1 %v3164_v30 }
 0x6eb   : > { %2941 = vmatpush3.msra.mxu1 %v1903_v10 }
 0x6ec   : > { %2914 = vmatpush3.xpose.msk.msra.mxu0 %vm982_vm2, %v1747_v60  ;;  %v1901_v23 = vpop.permute.xlu1 %1900  ;;  %2942 = vmatprep.subr.mxu1 %v3164_v30 }
 0x6ed   : > { %2943 = vmatpush3.msra.mxu1 %v1901_v23  ;;  %2915 = vmatprep.subr.mxu0 %v3164_v30 }
 0x6ee   : > { %2944 = vmatprep.subr.mxu1 %v3164_v30 }
 0x6f0   : > { %2916 = vmatpush3.xpose.msk.msra.mxu0 %vm982_vm2, %v1745_v9  ;;  %v1899_v36 = vpop.permute.xlu1 %1898 }
 0x6f1   : > { %2945 = vmatpush3.msra.mxu1 %v1899_v36  ;;  %2917 = vmatprep.subr.mxu0 %v3164_v30 }
 0x6f2   : > { %2946 = vmatprep.subr.mxu1 %v3164_v30 }
 0x6f4   : > { %2918 = vmatpush3.xpose.msk.msra.mxu0 %vm982_vm2, %v4030_v0  ;;  %v1897_v38 = vpop.permute.xlu1 %1896 }
 0x6f5   : > { %2947 = vmatpush3.msra.mxu1 %v1897_v38 }
 0x6f6   : > { %2948 = vmatprep.subr.mxu1 %v3164_v30 }
 0x6f7   : > { %2920 = vmatmul.mubr.msk.f32.vlgmr.msra.gmra.mxu0 %vm982_vm2, %v1741_v20 }
 0x6f8   : > { %v1895_v58 = vpop.permute.xlu1 %1894 }
 0x6f9   : > { %2949 = vmatpush3.msra.mxu1 %v1895_v58 }
 0x6fa   : > { %2950 = vmatprep.subr.mxu1 %v3164_v30 }
 0x6fc   : > { %v1893_v42 = vpop.permute.xlu1 %1892 }
 0x6fd   : > { %2951 = vmatpush3.msra.mxu1 %v1893_v42 }
 0x6fe   : > { %2952 = vmatprep.subr.mxu1 %v3164_v30 }
 0x72d   : > { %v1330_v15 = vpop.xlane.xlu1 %1329 }
 0x731   : > { %v1110_v27 = vpop.xlane.xlu1 %1109 }
 0x777   : > { %v1735_v41 = vpop.f32.mrf.mxu0 }
 0x779   : > { %v2886_v47 = vpop.f32.mrf.mxu0 }
 0x7b7   : > { %v1874_v50 = vpop.f32.mrf.mxu0 }
 0x7b8   : > { %v1875_v53 = vadd.f32 %v1874_v50, %v3786_v4 }
 0x7b9   : > { %v2921_v56 = vpop.f32.mrf.mxu0 }
 0x7ba   : > { %1878 = vmax.xlane.f32.xlu0 %v1875_v53 }
 0x7d0   : > { %1890 = vrot.lane.b32.xlu0 %v3666_v14, %s3168_s24  ;;  %s2157_s24 = scalar_lea.hbm %s4187_s9, %s4189_s23 }
 0x7ef   : > { %1614 = vadd.xlane.f32.xlu0 %v4018_v51 }
 0x843   : > { %v1879_v62 = vpop.xlane.xlu0 %1878 }
 0x844   : > { %v1880_v1 = vsub.f32 %v1875_v53, %v1879_v62 }
 0x846   : > { %v1881_v35 = vmul.f32 1.442695, %v1880_v1 }
 0x847   : > { %v1891_v5 = vpop.permute.xlu0 %1890 }
 0x848   : > { %3045 = vpow2.f32 %v1881_v35  ;;  %2953 = vmatpush3.msra.mxu1 %v1891_v5 }
 0x849   : > { %2957 = vmatprep.subr.mxu1 %v3164_v30  ;;  %3047 = vrcp.f32 %v1330_v15 }
 0x84a   : > { %3049 = vrcp.f32 %v1110_v27 }
 0x855   : > { %v3046_v7 = vpop.eup %3045 }
 0x856   : > { %1883 = vadd.xlane.f32.xlu0 %v3046_v7  ;;  %2955 = vmatmul.mubr.f32.vlgmr.msra.gmra.mxu1 %v3046_v7  ;;  %v3048_v4 = vpop.eup %3047 }
 0x857   : > { %2965 = vmatprep.mubr.msk.f32.mxu1 %vm3165_vm1, %v3164_v30  ;;  %v1470_v14 = vmul.f32 %v3048_v4, %v3969_v39  ;;  %v3050_v24 = vpop.eup %3049  ;;  %v1333_v32 = vmul.f32 0.25, %v3048_v4  ;;  %2958 = vmatpush3.xpose.msk.msra.mxu1 %vm419_vm0, %v2030_v44 }
 0x858   : > { %v1113_v33 = vmul.f32 0.25, %v3050_v24  ;;  %2959 = vmatprep.subr.mxu1 %v3164_v30  ;;  %v1185_v63 = vmul.f32 %v3050_v24, %v3890_v22 }
 0x859   : > { %v1334_v25 = vmul.f32 %v3915_v61, %v1333_v32  ;;  %v2028_v61 = vld [vmem:[%s4182_s4 + $0x8] sm:$0xff] }
 0x85a   : > { %v1114_v34 = vmul.f32 %v3819_v40, %v1113_v33  ;;  %v2029_v40 = vld [vmem:[%s4182_s4 + $0x10] sm:$0xff] }
 0x85b   : > { %2960 = vmatpush3.xpose.msk.msra.mxu1 %vm419_vm0, %v2029_v40 }
 0x85c   : > { %v1335_v37 = vadd.f32 %v1334_v25, %v1114_v34  ;;  %2961 = vmatprep.subr.mxu1 %v3164_v30 }
 0x85f   : > { %2962 = vmatpush3.xpose.msk.msra.mxu1 %vm419_vm0, %v2028_v61 }
 0x860   : > { %2963 = vmatprep.subr.mxu1 %v3164_v30 }
 0x863   : > { %2964 = vmatpush3.xpose.msk.msra.mxu1 %vm419_vm0, %v2027_v45 }
 0x86c   : > { %2011 = vrot.lane.b32.xlu0 %v1470_v14, %s3170_s28  ;;  %s4104_s28 = sand.u32 1, %s3146_s10  }
 0x86d   : > { %s2131_s26 = scalar_lea.sflag [#allocation7], %s4104_s28 }
 0x878   : > { %v1615_v31 = vpop.xlane.xlu0 %1614 }
 0x879   : > { %3051 = vrcp.f32 %v1615_v31 }
 0x886   : > { %v3052_v59 = vpop.eup %3051 }
 0x887   : > { %v1739_v6 = vmul.f32 %v3052_v59, %v1735_v41  ;;  %v1618_v16 = vmul.f32 0.25, %v3052_v59 }
 0x889   : > { %2015 = vrot.lane.b32.xlu1 %v1739_v6, %s3171_s29  ;;  %v1619_v39 = vmul.f32 %v4018_v51, %v1618_v16  ;;  %s4188_s29 = sshll.u32 %s4104_s28, 3 }
 0x88a   : > { %s373_s15 = scalar_lea.vmem [#allocation6], %s4188_s29  ;;  %s3173_s29 = smov [#allocation6]  }
 0x88b   : > { %v1620_v43 = vadd.f32 %v1619_v39, %v1335_v37  ;;  %s2159_s25 = sshll.u32 %s373_s15, 4  ;;  %s3060_s0 = sshll.u32 %s3173_s29, 4  ;;  %s2160_s25 = int_to_ptr.vmem [resolvable:$true] %s2159_s25  ;;  %s3061_s0 = int_to_ptr.vmem [resolvable:$false] %s3060_s0 }
 0x88c   : > { %s3062_s1 = scalar_lea.vmem %s3061_s0, 256  ;;  %p3063_p1 = scmp.lt.s32.totalorder %s2160_s25, %s3061_s0 }
 0x8df   : > { %v1884_v46 = vpop.xlane.xlu0 %1883 }
 0x8e0   : > { %3053 = vrcp.f32 %v1884_v46 }
 0x8e3   : > { %v2012_v57 = vpop.permute.xlu0 %2011 }
 0x8e4   : > { %v2022_v0 = vsel %vm982_vm2, %v1185_v63, %v2012_v57 }
 0x8ed   : > { %v3054_v48 = vpop.eup %3053 }
 0x8ee   : > { %v1887_v49 = vmul.f32 0.25, %v3054_v48 }
 0x8f0   : > { %v1888_v51 = vmul.f32 %v3046_v7, %v1887_v49 }
 0x8f2   : > { %v1889_v52 = vadd.f32 %v1888_v51, %v1620_v43 }
 0x8f4   : > { %2009 = vst [vmem:[%s373_s15] sm:$0xff] %v1889_v52 }
 0x8fb   : > { %v2016_v60 = vpop.permute.xlu1 %2015 }
 0x8fc   : > { %v2024_v2 = vsel %vm2023_vm4, %v2022_v0, %v2016_v60 }
 0x916   : > { %v2004_v30 = vpop.f32.mrf.mxu1 }
 0x917   : > { %v2008_v54 = vmul.f32 %v3054_v48, %v2004_v30 }
 0x918   : > { %v2956_v55 = vpop.f32.mrf.mxu1 }
 0x919   : > { %2019 = vrot.lane.b32.xlu1 %v2008_v54, %s3172_s16  ;;  %s3056_s16 = scalar_lea.vmem %s2160_s25, 128 }
 0x91a   : > { %p3057_p12 = scmp.ne.s32.totalorder %s2160_s25, %s3056_s16  ;;  %p3064_p2 = scmp.lt.s32.totalorder %s3062_s1, %s3056_s16 }
 0x91c   : > { %p3058_p13 = pnand %p3057_p12, %p3265_p4  ;;  %p3065_p3 = por %p3064_p2, %p3063_p1 }
 0x91e   : > { %p3059_p0 = pneg %p3058_p13 }
 0x920   : > { %p3066_p5 = pnand %p3065_p3, %p3059_p0 }
 0x98b   : > { %v2020_v3 = vpop.permute.xlu1 %2019 }
 0x98c   : > { %v2026_v11 = vsel %vm2025_vm5, %v2024_v2, %v2020_v3 }
 0x98d   : > { %2966 = vmatmul.mubr.msk.f32.vlgmr.msra.gmra.mxu1 %vm419_vm0, %v2026_v11 }
 0x98e   : > { %3069 = shalt.err (!%p3066_p5)
}
 0x98f   : > { %s3070_s2 = scalar_lea.hbm %s2157_s24, 128  ;;  %s3074_s20 = scalar_lea.hbm %s4187_s9, 256 }
 0x990   : > { %p3071_p6 = scmp.ne.s32.totalorder %s2157_s24, %s3070_s2  ;;  %p3075_p10 = scmp.lt.s32.totalorder %s2157_s24, %s4187_s9 }
 0x991   : > { %p3076_p11 = scmp.lt.s32.totalorder %s3074_s20, %s3070_s2 }
 0x992   : > { %p3072_p7 = pnand %p3071_p6, %p3265_p4 }
 0x993   : > { %p3077_p12 = por %p3076_p11, %p3075_p10 }
 0x994   : > { %p3073_p9 = pneg %p3072_p7 }
 0x996   : > { %p3078_p13 = pnand %p3077_p12, %p3073_p9 }
 0x998   : > { %3081 = shalt.err (!%p3078_p13)
}
 0x999   : > { %2969 = dma.vmem_to_hbm [thread:$0]  (%p3265_p4), %s2160_s25, 128, %s2157_s24, %s2131_s26   ;;  %v2403_v22 = vld [vmem:[%s4183_s5] ss:$0 sm:$0xff] }
 0x99a   : > { %s4200_s29 = sshll.u32 %s4104_s28, 3  ;;  %v3055_v26 = vld [vmem:[%s3306_s27] sm:$0xff]  ;;  %s4201_s2 = sshll.u32 %s3154_s12, 7 }
 0x99b   : > { %s366_s3 = scalar_lea.vmem [#allocation4], %s4200_s29  ;;  %s2143_s18 = scalar_lea.hbm %s4186_s8, %s4201_s2 }
 0x99c   : > { %s2145_s23 = sshll.u32 %s366_s3, 4  ;;  %s2126_s24 = scalar_lea.sflag [#allocation5], %s4104_s28  ;;  %s2146_s23 = int_to_ptr.vmem [resolvable:$true] %s2145_s23 }
 0x99d   : > { %s3082_s25 = scalar_lea.vmem %s2146_s23, 128  ;;  %s3174_s26 = smov [#allocation4]  }
 0x99e   : > { %p3083_p0 = scmp.ne.s32.totalorder %s2146_s23, %s3082_s25  ;;  %s3086_s20 = sshll.u32 %s3174_s26, 4  ;;  %s3087_s20 = int_to_ptr.vmem [resolvable:$false] %s3086_s20 }
 0x99f   : > { %s3088_s0 = scalar_lea.vmem %s3087_s20, 256  ;;  %p3089_p3 = scmp.lt.s32.totalorder %s2146_s23, %s3087_s20 }
 0x9a0   : > { %p3084_p1 = pnand %p3083_p0, %p3265_p4  ;;  %p3090_p5 = scmp.lt.s32.totalorder %s3088_s0, %s3082_s25 }
 0x9a2   : > { %p3085_p2 = pneg %p3084_p1  ;;  %p3091_p6 = por %p3090_p5, %p3089_p3 }
 0x9a4   : > { %p3092_p7 = pnand %p3091_p6, %p3085_p2 }
 0xa4d   : > { %v2119_v28 = vpop.f32.mrf.mxu1 }
 0xa4e   : > { %v2120_v12 = vadd.f32 %v2403_v22, %v2119_v28 }
 0xa4f   : > { %v2967_v13 = vpop.f32.mrf.mxu1 }
 0xa50   : > { %v2123_v29 = vadd.f32 %v3055_v26, %v2120_v12 }
 0xa52   : > { %2124 = vst.msk [vmem:[%s366_s3] sm:$0xff] %vm419_vm0, %v2123_v29 }
 0xa53   : > { %3095 = shalt.err (!%p3092_p7)
}
 0xa54   : > { %s3096_s12 = scalar_lea.hbm %s2143_s18, 128  ;;  %s3100_s1 = scalar_lea.hbm %s4186_s8, 256 }
 0xa55   : > { %p3097_p9 = scmp.ne.s32.totalorder %s2143_s18, %s3096_s12  ;;  %p3101_p12 = scmp.lt.s32.totalorder %s2143_s18, %s4186_s8 }
 0xa56   : > { %p3102_p13 = scmp.lt.s32.totalorder %s3100_s1, %s3096_s12 }
 0xa57   : > { %p3098_p10 = pnand %p3097_p9, %p3265_p4 }
 0xa58   : > { %p3103_p0 = por %p3102_p13, %p3101_p12 }
 0xa59   : > { %p3099_p11 = pneg %p3098_p10 }
 0xa5b   : > { %p3104_p1 = pnand %p3103_p0, %p3099_p11 }
 0xa5d   : > { %3107 = shalt.err (!%p3104_p1)
}
 0xa5e   : > { %2968 = dma.vmem_to_hbm [thread:$0]  (%p3265_p4), %s2146_s23, 128, %s2143_s18, %s2126_s24  }
 0xa5f PF: > { %p2979_p2 = scmp.ge.s32.totalorder %s3162_s14, 2  ;;  %s2171_s2 = sand.u32 1, %s3142_s30  }
 0xa60   : > { %s2172_s16 = scalar_lea.sflag [#allocation5], %s2171_s2 }
 0xa61   : > { %p2973_p3 = pnand %p2979_p2, %p3272_p8 }
 0xa63   : > { %p2974_p5 = pneg %p2973_p3 }
 0xa65   : > { %3133 = dma.done.wait (%p2974_p5), %s2172_s16, 128  }
 0xa66   : > { %3135 = vsyncadd (%p2974_p5), %s2172_s16, 4294967168  ;;  %s2181_s15 = scalar_lea.sflag [#allocation7], %s2171_s2 }
 0xa67   : > { %3137 = dma.done.wait (%p2974_p5), %s2181_s15, 128  }
 0xa68   : > { %3139 = vsyncadd (%p2974_p5), %s2181_s15, 4294967168  ;;  %s26_s14 = sadd.s32 1, %s3162_s14   ;;  %s4202_s30 = smov %s3146_s10 }
 0xa69   : > { %p23_p6 = scmp.ge.s32.totalorder %s26_s14, 4   ;;  %s4203_s10 = smov %s3150_s11 }
 0xa6a   : > { %s4204_s11 = smov %s3278_s22  ;;  %s4205_s12 = smov %s3158_s13 }
 0xa6b   : > { %s4206_s13 = smov %s4208_s17  ;;  %25 = sbr.rel (!%p23_p6) target bundleno = 11 (0xb), region = 111 }
 0xa70   :  { %2186 = vsyncpa [#allocation5], 1 }
 0xa71   :  { %2188 = vsyncpa [#allocation5 + $0x1], 1 }
 0xa72   :  { %2189 = vsyncpa [#allocation7], 1 }
 0xa73   :  { %2191 = vsyncpa [#allocation7 + $0x1], 1 }

</bundles_post_ra>
